<compile_context>
chip_gen: v7x
topology: tpu7x:2x2x1
jax: 0.10.0
libtpu: 0.0.40
codegen_flags: <defaults>
</compile_context>

<pallas_src>
import functools
import math

import jax
import jax.numpy as jnp
from jax import lax
from jax.experimental import pallas as pl
from jax.experimental.pallas import tpu as pltpu

NEG_INF = -1.0e30  # large finite negative; exp() underflows to exactly 0


# ------------------------------------------------------------------
# Kernel
# ------------------------------------------------------------------

def _flash_fwd_kernel(q_ref, k_ref, v_ref, o_ref, m_sc, l_sc, acc_sc,
                      *, scale, causal, tq, tk):
    qi = pl.program_id(1)
    ki = pl.program_id(2)

    @pl.when(ki == 0)
    def _init():
        m_sc[...] = jnp.full_like(m_sc, NEG_INF)
        l_sc[...] = jnp.zeros_like(l_sc)
        acc_sc[...] = jnp.zeros_like(acc_sc)

    def _compute():
        q = q_ref[0]                                   # (tq, E)
        k = k_ref[0]                                   # (tk, E)
        v = v_ref[0]                                   # (tk, D)

        # scores = scale * (Q @ K^T)  -> MXU, f32 accumulation
        s = lax.dot_general(q, k, (((1,), (1,)), ((), ())),
                            preferred_element_type=jnp.float32) * scale

        if causal:
            row = qi * tq + lax.broadcasted_iota(jnp.int32, (tq, tk), 0)
            col = ki * tk + lax.broadcasted_iota(jnp.int32, (tq, tk), 1)
            s = jnp.where(col <= row, s, NEG_INF)

        m_prev = m_sc[...]                             # (tq, 1)
        m_new = jnp.maximum(m_prev, s.max(axis=-1, keepdims=True))
        alpha = jnp.exp(m_prev - m_new)
        p = jnp.exp(s - m_new)                         # (tq, tk)

        l_sc[...] = alpha * l_sc[...] + p.sum(axis=-1, keepdims=True)
        acc_sc[...] = alpha * acc_sc[...] + lax.dot_general(
            p.astype(v.dtype), v, (((1,), (0,)), ((), ())),
            preferred_element_type=jnp.float32)
        m_sc[...] = m_new

    if causal:
        # Skip KV blocks that lie entirely above the causal diagonal.
        pl.when(ki * tk <= qi * tq + (tq - 1))(_compute)
    else:
        _compute()

    @pl.when(ki == pl.num_programs(2) - 1)
    def _finalize():
        inv_l = pl.reciprocal(l_sc[...], approx=True)
        o_ref[0] = (acc_sc[...] * inv_l).astype(o_ref.dtype)


# ------------------------------------------------------------------
# Wrapper (mirrors FullAttention.forward)
# ------------------------------------------------------------------

def full_attention(queries, keys, values, attn_mask=None, *,
                   mask_flag=True, scale=None, output_attention=False,
                   block_q=128, block_k=128):
    """queries (B,L,H,E), keys (B,S,H,E), values (B,S,H,D) -> (V, None)."""
    B, L, H, E = queries.shape
    _, S, _, D = values.shape
    scale = scale if scale is not None else 1.0 / math.sqrt(E)

    # TODO(synk): explicit user-supplied attn_mask tensors are not supported;
    # mask_flag=True with attn_mask=None reproduces TriangularCausalMask.
    assert attn_mask is None
    # TODO(synk): nn.Dropout(attention_dropout) is identity in eval mode; the
    # training-mode dropout on the attention matrix is not implemented here.
    # TODO(synk): output_attention=True (returning the full A matrix) is not
    # materialized by the fused kernel; the module's default path returns None.

    # (B, L, H, E) -> (B*H, L, E): head dim on the lane axis (dense), seq on sublane.
    qf = jnp.transpose(queries, (0, 2, 1, 3)).reshape(B * H, L, E)
    kf = jnp.transpose(keys, (0, 2, 1, 3)).reshape(B * H, S, E)
    vf = jnp.transpose(values, (0, 2, 1, 3)).reshape(B * H, S, D)

    tq = min(block_q, L)
    tk = min(block_k, S)
    assert L % tq == 0 and S % tk == 0, "seq lengths must divide the tile sizes"

    grid = (B * H, L // tq, S // tk)
    kernel = functools.partial(_flash_fwd_kernel, scale=scale,
                               causal=bool(mask_flag), tq=tq, tk=tk)

    of = pl.pallas_call(
        kernel,
        out_shape=jax.ShapeDtypeStruct((B * H, L, D), queries.dtype),
        grid_spec=pltpu.PrefetchScalarGridSpec(
            num_scalar_prefetch=0,
            grid=grid,
            in_specs=[
                pl.BlockSpec((1, tq, E), lambda b, qi, ki: (b, qi, 0)),
                pl.BlockSpec((1, tk, E), lambda b, qi, ki: (b, ki, 0)),
                pl.BlockSpec((1, tk, D), lambda b, qi, ki: (b, ki, 0)),
            ],
            out_specs=pl.BlockSpec((1, tq, D), lambda b, qi, ki: (b, qi, 0)),
            scratch_shapes=[
                pltpu.VMEM((tq, 1), jnp.float32),   # running row max
                pltpu.VMEM((tq, 1), jnp.float32),   # running denominator
                pltpu.VMEM((tq, D), jnp.float32),   # output accumulator
            ],
        ),
        compiler_params=pltpu.CompilerParams(
            dimension_semantics=("parallel", "parallel", "arbitrary")),
    )(qf, kf, vf)

    V = jnp.transpose(of.reshape(B, H, L, D), (0, 2, 1, 3))
    return V, None


# ------------------------------------------------------------------

if __name__ == "__main__":
    B, L, H, E = 2, 256, 2, 128
    S, D = L, E

    root = jax.random.PRNGKey(0)
    kq, kk, kv = jax.random.split(root, 3)
    q = jax.random.normal(kq, (B, L, H, E), jnp.float32)
    k = jax.random.normal(kk, (B, S, H, E), jnp.float32)
    v = jax.random.normal(kv, (B, S, H, D), jnp.float32)

    out, attn = full_attention(q, k, v, attn_mask=None, mask_flag=True)
    out = jax.block_until_ready(out)
    assert out.shape == (B, L, H, D) and out.dtype == jnp.float32
    assert attn is None

    # Pure-JAX reference (matches the torch module: mask -> scale -> softmax).
    scale = 1.0 / math.sqrt(E)
    scores = jnp.einsum("blhe,bshe->bhls", q, k)
    causal_mask = jnp.triu(jnp.ones((L, S), dtype=bool), 1)
    scores = jnp.where(causal_mask[None, None], -jnp.inf, scores)
    A = jax.nn.softmax(scale * scores, axis=-1)
    ref = jnp.einsum("bhls,bshd->blhd", A, v)

    err = float(jnp.max(jnp.abs(out - ref)))
    assert jnp.allclose(out, ref, atol=1e-2, rtol=1e-2), f"max abs err {err}"
    print("KERNEL_OK")
</pallas_src>

<mosaic_0001>
module attributes {stable_mosaic.version = 11 : i64} {
  func.func @_flash_fwd_kernel(%arg0: i32, %arg1: i32, %arg2: i32, %arg3: memref<1x128x128xf32, #tpu.memory_space<vmem>>, %arg4: memref<1x128x128xf32, #tpu.memory_space<vmem>>, %arg5: memref<1x128x128xf32, #tpu.memory_space<vmem>>, %arg6: memref<1x128x128xf32, #tpu.memory_space<vmem>>, %arg7: memref<128x1xf32, #tpu.memory_space<vmem>>, %arg8: memref<128x1xf32, #tpu.memory_space<vmem>>, %arg9: memref<128x128xf32, #tpu.memory_space<vmem>>) attributes {dimension_semantics = [#tpu.dimension_semantics<parallel>, #tpu.dimension_semantics<parallel>, #tpu.dimension_semantics<arbitrary>], iteration_bounds = array<i64: 4, 2, 2>, scalar_prefetch = 0 : i64, scratch_operands = 3 : i64, tpu.core_type = #tpu.core_type<tc>, window_params = [{transform_indices = @transform_0, window_bounds = array<i64: 1, 128, 128>}, {transform_indices = @transform_1, window_bounds = array<i64: 1, 128, 128>}, {transform_indices = @transform_2, window_bounds = array<i64: 1, 128, 128>}, {transform_indices = @transform_3, window_bounds = array<i64: 1, 128, 128>}]} {
    %c0_i32 = arith.constant 0 : i32
    %0 = arith.cmpi eq, %arg2, %c0_i32 : i32
    %1 = arith.extui %0 : i1 to i32
    %c0_i32_0 = arith.constant 0 : i32
    %2 = arith.cmpi ne, %1, %c0_i32_0 : i32
    scf.if %2 {
      %cst = arith.constant -1.000000e+30 : f32
      %12 = vector.broadcast %cst : f32 to vector<128x1xf32>
      %c0 = arith.constant 0 : index
      %c0_4 = arith.constant 0 : index
      %13 = vector.load %arg7[%c0, %c0_4] : memref<128x1xf32, #tpu.memory_space<vmem>>, vector<128x1xf32>
      tpu.vector_store %arg7[%c0, %c0_4], %12 {strides = array<i32>} : memref<128x1xf32, #tpu.memory_space<vmem>>, vector<128x1xf32>,
      %cst_5 = arith.constant 0.000000e+00 : f32
      %14 = vector.broadcast %cst_5 : f32 to vector<128x1xf32>
      %c0_6 = arith.constant 0 : index
      %c0_7 = arith.constant 0 : index
      %15 = vector.load %arg8[%c0_6, %c0_7] : memref<128x1xf32, #tpu.memory_space<vmem>>, vector<128x1xf32>
      tpu.vector_store %arg8[%c0_6, %c0_7], %14 {strides = array<i32>} : memref<128x1xf32, #tpu.memory_space<vmem>>, vector<128x1xf32>,
      %cst_8 = arith.constant 0.000000e+00 : f32
      %16 = vector.broadcast %cst_8 : f32 to vector<128x128xf32>
      %c0_9 = arith.constant 0 : index
      %c0_10 = arith.constant 0 : index
      %17 = vector.load %arg9[%c0_9, %c0_10] : memref<128x128xf32, #tpu.memory_space<vmem>>, vector<128x128xf32>
      tpu.vector_store %arg9[%c0_9, %c0_10], %16 {strides = array<i32>} : memref<128x128xf32, #tpu.memory_space<vmem>>, vector<128x128xf32>,
    } else {
    }
    %c128_i32 = arith.constant 128 : i32
    %3 = arith.muli %arg2, %c128_i32 : i32
    %c128_i32_1 = arith.constant 128 : i32
    %4 = arith.muli %arg1, %c128_i32_1 : i32
    %c127_i32 = arith.constant 127 : i32
    %5 = arith.addi %4, %c127_i32 : i32
    %6 = arith.cmpi sle, %3, %5 : i32
    %7 = arith.extui %6 : i1 to i32
    %c0_i32_2 = arith.constant 0 : i32
    %8 = arith.cmpi ne, %7, %c0_i32_2 : i32
    scf.if %8 {
      %c0 = arith.constant 0 : index
      %c0_4 = arith.constant 0 : index
      %c0_5 = arith.constant 0 : index
      %12 = vector.load %arg3[%c0, %c0_4, %c0_5] : memref<1x128x128xf32, #tpu.memory_space<vmem>>, vector<1x128x128xf32>
      %13 = vector.shape_cast %12 : vector<1x128x128xf32> to vector<128x128xf32>
      %c0_6 = arith.constant 0 : index
      %c0_7 = arith.constant 0 : index
      %c0_8 = arith.constant 0 : index
      %14 = vector.load %arg4[%c0_6, %c0_7, %c0_8] : memref<1x128x128xf32, #tpu.memory_space<vmem>>, vector<1x128x128xf32>
      %15 = vector.shape_cast %14 : vector<1x128x128xf32> to vector<128x128xf32>
      %c0_9 = arith.constant 0 : index
      %c0_10 = arith.constant 0 : index
      %c0_11 = arith.constant 0 : index
      %16 = vector.load %arg5[%c0_9, %c0_10, %c0_11] : memref<1x128x128xf32, #tpu.memory_space<vmem>>, vector<1x128x128xf32>
      %17 = vector.shape_cast %16 : vector<1x128x128xf32> to vector<128x128xf32>
      %cst = arith.constant dense<0.000000e+00> : vector<128x128xf32>
      %18 = tpu.matmul %13, %15, %cst {dimension_numbers = #tpu.dot_dimension_numbers<[1], [1], [0], [0], [0, 0, 1, 0], [], []>} : vector<128x128xf32>, vector<128x128xf32>, vector<128x128xf32> -> vector<128x128xf32>
      %cst_12 = arith.constant 0.0883883461 : f32
      %19 = vector.broadcast %cst_12 : f32 to vector<128x128xf32>
      %20 = arith.mulf %18, %19 : vector<128x128xf32>
      %c128_i32_13 = arith.constant 128 : i32
      %21 = arith.muli %arg1, %c128_i32_13 : i32
      %22 = tpu.iota {dimensions = array<i32: 0>} : vector<128x128xi32>
      %23 = vector.broadcast %21 : i32 to vector<128x128xi32>
      %24 = arith.addi %23, %22 : vector<128x128xi32>
      %c128_i32_14 = arith.constant 128 : i32
      %25 = arith.muli %arg2, %c128_i32_14 : i32
      %26 = tpu.iota {dimensions = array<i32: 1>} : vector<128x128xi32>
      %27 = vector.broadcast %25 : i32 to vector<128x128xi32>
      %28 = arith.addi %27, %26 : vector<128x128xi32>
      %29 = arith.cmpi sle, %28, %24 : vector<128x128xi32>
      %cst_15 = arith.constant -1.000000e+30 : f32
      %30 = vector.broadcast %cst_15 : f32 to vector<128x128xf32>
      %31 = arith.select %29, %20, %30 : vector<128x128xi1>, vector<128x128xf32>
      %c0_16 = arith.constant 0 : index
      %c0_17 = arith.constant 0 : index
      %32 = vector.load %arg7[%c0_16, %c0_17] : memref<128x1xf32, #tpu.memory_space<vmem>>, vector<128x1xf32>
      %cst_18 = arith.constant dense<0xFF800000> : vector<128xf32>
      %33 = vector.multi_reduction <maximumf>, %31, %cst_18 [1] : vector<128x128xf32> to vector<128xf32>
      %34 = vector.shape_cast %33 : vector<128xf32> to vector<128x1xf32>
      %35 = arith.maximumf %32, %34 : vector<128x1xf32>
      %36 = arith.subf %32, %35 : vector<128x1xf32>
      %37 = math.exp %36 : vector<128x1xf32>
      %38 = vector.broadcast %35 : vector<128x1xf32> to vector<128x128xf32>
      %39 = arith.subf %31, %38 : vector<128x128xf32>
      %40 = math.exp %39 : vector<128x128xf32>
      %c0_19 = arith.constant 0 : index
      %c0_20 = arith.constant 0 : index
      %41 = vector.load %arg8[%c0_19, %c0_20] : memref<128x1xf32, #tpu.memory_space<vmem>>, vector<128x1xf32>
      %42 = arith.mulf %37, %41 : vector<128x1xf32>
      %cst_21 = arith.constant dense<0.000000e+00> : vector<128xf32>
      %43 = vector.multi_reduction <add>, %40, %cst_21 [1] : vector<128x128xf32> to vector<128xf32>
      %44 = vector.shape_cast %43 : vector<128xf32> to vector<128x1xf32>
      %45 = arith.addf %42, %44 : vector<128x1xf32>
      %c0_22 = arith.constant 0 : index
      %c0_23 = arith.constant 0 : index
      %46 = vector.load %arg8[%c0_22, %c0_23] : memref<128x1xf32, #tpu.memory_space<vmem>>, vector<128x1xf32>
      tpu.vector_store %arg8[%c0_22, %c0_23], %45 {strides = array<i32>} : memref<128x1xf32, #tpu.memory_space<vmem>>, vector<128x1xf32>,
      %c0_24 = arith.constant 0 : index
      %c0_25 = arith.constant 0 : index
      %47 = vector.load %arg9[%c0_24, %c0_25] : memref<128x128xf32, #tpu.memory_space<vmem>>, vector<128x128xf32>
      %48 = vector.broadcast %37 : vector<128x1xf32> to vector<128x128xf32>
      %49 = arith.mulf %48, %47 : vector<128x128xf32>
      %cst_26 = arith.constant dense<0.000000e+00> : vector<128x128xf32>
      %50 = tpu.matmul %40, %17, %cst_26 {dimension_numbers = #tpu.dot_dimension_numbers<[1], [0], [0], [1], [0, 0, 1, 1], [], []>} : vector<128x128xf32>, vector<128x128xf32>, vector<128x128xf32> -> vector<128x128xf32>
      %51 = arith.addf %49, %50 : vector<128x128xf32>
      %c0_27 = arith.constant 0 : index
      %c0_28 = arith.constant 0 : index
      %52 = vector.load %arg9[%c0_27, %c0_28] : memref<128x128xf32, #tpu.memory_space<vmem>>, vector<128x128xf32>
      tpu.vector_store %arg9[%c0_27, %c0_28], %51 {strides = array<i32>} : memref<128x128xf32, #tpu.memory_space<vmem>>, vector<128x128xf32>,
      %c0_29 = arith.constant 0 : index
      %c0_30 = arith.constant 0 : index
      %53 = vector.load %arg7[%c0_29, %c0_30] : memref<128x1xf32, #tpu.memory_space<vmem>>, vector<128x1xf32>
      tpu.vector_store %arg7[%c0_29, %c0_30], %35 {strides = array<i32>} : memref<128x1xf32, #tpu.memory_space<vmem>>, vector<128x1xf32>,
    } else {
    }
    %c1_i32 = arith.constant 1 : i32
    %9 = arith.cmpi eq, %arg2, %c1_i32 : i32
    %10 = arith.extui %9 : i1 to i32
    %c0_i32_3 = arith.constant 0 : i32
    %11 = arith.cmpi ne, %10, %c0_i32_3 : i32
    scf.if %11 {
      %c0 = arith.constant 0 : index
      %c0_4 = arith.constant 0 : index
      %12 = vector.load %arg8[%c0, %c0_4] : memref<128x1xf32, #tpu.memory_space<vmem>>, vector<128x1xf32>
      %13 = tpu.reciprocal %12 {approx = true} : vector<128x1xf32> -> vector<128x1xf32>
      %c0_5 = arith.constant 0 : index
      %c0_6 = arith.constant 0 : index
      %14 = vector.load %arg9[%c0_5, %c0_6] : memref<128x128xf32, #tpu.memory_space<vmem>>, vector<128x128xf32>
      %15 = vector.broadcast %13 : vector<128x1xf32> to vector<128x128xf32>
      %16 = arith.mulf %14, %15 : vector<128x128xf32>
      %c0_7 = arith.constant 0 : index
      %c0_8 = arith.constant 0 : index
      %c0_9 = arith.constant 0 : index
      %17 = vector.load %arg6[%c0_7, %c0_8, %c0_9] : memref<1x128x128xf32, #tpu.memory_space<vmem>>, vector<1x128x128xf32>
      %18 = vector.shape_cast %17 : vector<1x128x128xf32> to vector<128x128xf32>
      %19 = vector.shape_cast %16 : vector<128x128xf32> to vector<1x128x128xf32>
      tpu.vector_store %arg6[%c0_7, %c0_8, %c0_9], %19 {strides = array<i32>} : memref<1x128x128xf32, #tpu.memory_space<vmem>>, vector<1x128x128xf32>,
    } else {
    }
    return
  }
  func.func @transform_0(%arg0: i32, %arg1: i32, %arg2: i32) -> (i32, i32, i32) {
    %c0_i32 = arith.constant 0 : i32
    %c0_i32_0 = arith.constant 0 : i32
    return %arg0, %arg1, %c0_i32 : i32, i32, i32
  }
  func.func @transform_1(%arg0: i32, %arg1: i32, %arg2: i32) -> (i32, i32, i32) {
    %c0_i32 = arith.constant 0 : i32
    %c0_i32_0 = arith.constant 0 : i32
    return %arg0, %arg2, %c0_i32 : i32, i32, i32
  }
  func.func @transform_2(%arg0: i32, %arg1: i32, %arg2: i32) -> (i32, i32, i32) {
    %c0_i32 = arith.constant 0 : i32
    %c0_i32_0 = arith.constant 0 : i32
    return %arg0, %arg2, %c0_i32 : i32, i32, i32
  }
  func.func @transform_3(%arg0: i32, %arg1: i32, %arg2: i32) -> (i32, i32, i32) {
    %c0_i32 = arith.constant 0 : i32
    %c0_i32_0 = arith.constant 0 : i32
    return %arg0, %arg1, %c0_i32 : i32, i32, i32
  }
}

</mosaic_0001>

<bundles_post_ra>
// kernel: tpu_custom_call.1
= control target key start
LH: loop header
LB: loop body
LE: loop exit
PB: predicated region body
PF: predicated region fallthrough
CT: control target
= control target key end

     0   :  { %s3273_s0 = inlined_call_operand.hbm [shape: f32[4,256,128], index: 0, kind: input, shape index: {}]   ;;  %s3274_s1 = inlined_call_operand.hbm [shape: f32[4,256,128], index: 1, kind: input, shape index: {}]   ;;  %s3275_s2 = inlined_call_operand.hbm [shape: f32[4,256,128], index: 2, kind: input, shape index: {}]   ;;  %s3276_s3 = inlined_call_operand.hbm [shape: f32[4,256,128], index: 3, kind: output, shape index: {}]  }
   0x1   :  { %3307 = sst [smem:[#allocation30_spill]] %s3274_s1 }
   0x2   :  { %3308 = sst [smem:[#allocation31_spill]] %s3276_s3 }
   0x3   :  { %8 = vsyncpa [#allocation6], 0 }
   0x4   :  { %10 = vsyncpa [#allocation6 + $0x1], 0 }
   0x5   :  { %11 = vsyncpa [#allocation9], 0 }
   0x6   :  { %13 = vsyncpa [#allocation9 + $0x1], 0 }
   0x7   :  { %14 = vsyncpa [#allocation7], 0 }
   0x8   :  { %16 = vsyncpa [#allocation7 + $0x1], 0  ;;  %s2383_s12 = smov 0   ;;  %s2385_s13 = smov 0  }
   0x9   :  { %s2387_s14 = smov 0   ;;  %s2389_s15 = smov 0  }
   0xa   :  { %s2391_s16 = smov 0   ;;  %s2393_s17 = smov 0  }
   0xb   :  { %s2395_s18 = smov 0   ;;  %s2397_s19 = smov 0  }
   0xc   :  { %s2399_s20 = smov 0   ;;  %s2401_s21 = smov 0  }
   0xd   :  { %s2403_s22 = smov 0   ;;  %s2405_s23 = smov 0  }
   0xe   :  { %s2407_s24 = smov 0  }
   0xf LB: > { %3309 = sst [smem:[#allocation15_spill]] %s2305_s13  ;;  %s2447_s25 = sadd.s32 4294967295, %s2349_s24   ;;  %s2349_s24 = sphi %s2407_s24, %s22_s24   ;;  %s2345_s23 = sphi %s2405_s23, %s3383_s23   ;;  %s2341_s22 = sphi %s2403_s22, %s3373_s22   ;;  %s2337_s21 = sphi %s2401_s21, %s3382_s21   ;;  %s2333_s20 = sphi %s2399_s20, %s3381_s20   ;;  %s2329_s19 = sphi %s2397_s19, %s3372_s19   ;;  %s2325_s18 = sphi %s2395_s18, %s3380_s18   ;;  %s2321_s17 = sphi %s2393_s17, %s3379_s17   ;;  %s2317_s16 = sphi %s2391_s16, %s3378_s16   ;;  %s2313_s15 = sphi %s2389_s15, %s3371_s15   ;;  %s2309_s14 = sphi %s2387_s14, %s3377_s14   ;;  %s2305_s13 = sphi %s2385_s13, %s3376_s13   ;;  %s2301_s12 = sphi %s2383_s12, %s3370_s12  }
  0x10   : > { %3310 = sst [smem:[#allocation16_spill]] %s2313_s15  ;;  %s34_s26 = sadd.s32 1, %s2337_s21 }
  0x11   : > { %3311 = sst [smem:[#allocation17_spill]] %s2317_s16  ;;  %p2450_p0 = scmp.ge.s32.totalorder %s34_s26, 2 }
  0x12   : > { %3312 = sst [smem:[#allocation18_spill]] %s2325_s18  ;;  %p3284_p1 = scmp.eq.s32.totalorder %s2349_s24, 0 }
  0x13   : > { %3313 = sst [smem:[#allocation19_spill]] %s2329_s19  ;;  %p3285_p2 = scmp.eq.s32.totalorder %s2447_s25, 0 }
  0x14   : > { %3314 = sst [smem:[#allocation20_spill]] %s2333_s20  ;;  %s3385_s26 = smov (%p2450_p0, %s34_s26), 0 }
  0x15   : > { %3315 = sst [smem:[#allocation21_spill]] %s2341_s22  ;;  %p85_p3 = scmp.ne.s32.totalorder %s2309_s14, %s2305_s13 }
  0x16   : > { %3316 = sst [smem:[#allocation22_spill]] %s2447_s25  ;;  %p91_p4 = scmp.ne.s32.totalorder %s2305_s13, %s2301_s12 }
  0x17   : > { %p2467_p5 = por %p85_p3, %p3284_p1  ;;  %p3283_p7 = scmp.lt.s32.totalorder %s2349_s24, 16 }
  0x18   : > { %p2473_p6 = por %p91_p4, %p3285_p2  ;;  %s3278_s5 = sshll.u32 %s2345_s23, 5 }
  0x19   : > { %s194_s6 = sand.u32 1, %s2349_s24   ;;  %s196_s7 = sand.u32 1, %s2309_s14  }
  0x1a   : > { %s3319_s4 = scalar_select %p2473_p6, 1, 0 }
  0x1b   : > { %s1617_s8 = sshll.u32 %s196_s7, 7  ;;  %s1618_s9 = sshll.u32 %s2337_s21, 4 }
  0x1c   : > { %3320 = sst [smem:[#allocation23_spill]] %s3319_s4  ;;  %s204_s10 = sadd.s32 %s1618_s9, %s3278_s5 }
  0x1d   : > { %s1620_s11 = sshll.u32 %s204_s10, 7  ;;  %s198_s12 = scalar_lea.vmem [#allocation8], %s1617_s8 }
  0x1e   : > { %s207_s29 = sshll.u32 %s198_s12, 4  ;;  %s3321_s1 = sld [smem:[#allocation30_spill]]  ;;  %s2489_s29 = int_to_ptr.vmem [resolvable:$true] %s207_s29 }
  0x1f   : > { %p2495_p8 = pnand %p3283_p7, %p2467_p5  ;;  %s2504_s3 = scalar_lea.hbm %s3275_s2, %s1620_s11 }
  0x20   : > { %s221_s28 = scalar_lea.vmem [#allocation10], %s1617_s8  ;;  %s2508_s19 = scalar_lea.sflag [#allocation9], %s194_s6 }
  0x21   : > { %s2506_s5 = sshll.u32 %s221_s28, 4  ;;  %p2119_p10 = pneg %p2495_p8  ;;  %s2546_s5 = int_to_ptr.vmem [resolvable:$true] %s2506_s5 }
  0x24   : > { %s2487_s20 = scalar_lea.hbm %s3321_s1, %s1620_s11  ;;  %s2122_s4 = scalar_lea.hbm %s3321_s1, 16384 }
  0x25   : > { %s2117_s30 = scalar_lea.hbm %s2487_s20, 2048  ;;  %p2123_p13 = scmp.lt.u32.totalorder %s2487_s20, %s3321_s1 }
  0x26   : > { %p2118_p9 = scmp.ne.s32.totalorder %s2487_s20, %s2117_s30  ;;  %p2124_p3 = scmp.lt.u32.totalorder %s2122_s4, %s2117_s30 }
  0x27   : > { %p2126_p5 = scmp.lt.u32.totalorder %s2117_s30, %s2487_s20 }
  0x28   : > { %p2120_p11 = pnand %p2119_p10, %p2118_p9  ;;  %p2125_p4 = por %p2124_p3, %p2123_p13 }
  0x2a   : > { %p2121_p12 = pneg %p2120_p11  ;;  %p2127_p7 = por %p2126_p5, %p2125_p4 }
  0x2c   : > { %p2128_p1 = pnand %p2127_p7, %p2121_p12 }
  0x2e   : > { %2131 = shalt.err (!%p2128_p1)
}
  0x2f   : > { %s2132_s6 = scalar_lea.vmem %s2489_s29, 2048  ;;  %s2351_s18 = smov [#allocation8]  }
  0x30   : > { %p2133_p9 = scmp.ne.s32.totalorder %s2489_s29, %s2132_s6  ;;  %s2137_s8 = sshll.u32 %s2351_s18, 4  ;;  %s2138_s8 = int_to_ptr.vmem [resolvable:$false] %s2137_s8 }
  0x31   : > { %s2139_s9 = scalar_lea.vmem %s2138_s8, 4096  ;;  %p2140_p6 = scmp.lt.s32.totalorder %s2489_s29, %s2138_s8 }
  0x32   : > { %p2135_p11 = pnand %p2133_p9, %p2119_p10  ;;  %p2141_p13 = scmp.lt.s32.totalorder %s2139_s9, %s2132_s6 }
  0x34   : > { %p2136_p2 = pneg %p2135_p11  ;;  %p2142_p3 = por %p2141_p13, %p2140_p6 }
  0x36   : > { %p2143_p4 = pnand %p2142_p3, %p2136_p2 }
  0x38   : > { %2146 = shalt.err (!%p2143_p4)
}
  0x39   : > { %s3287_s4 = smov 128   ;;  %s3289_s12 = smov 8  }
  0x3a   : > { %1895 = dma.hbm_to_vmem [thread:$0]  (!%p2495_p8), %s2487_s20, 2048, %s2489_s29, %s2508_s19, %s3287_s4, %s3287_s4, %s3289_s12  }
  0x3b   : > { %p1625_p1 = scmp.ge.s32.totalorder %s2349_s24, 1  ;;  %p238_p2 = scmp.lt.s32.totalorder %s2349_s24, 17 }
  0x3c   : > { %s1610_s30 = sadd.s32 4294967294, %s2349_s24   ;;  %s37_s10 = sadd.s32 1, %s2341_s22 }
  0x3d   : > { %p2541_p6 = pnand %p1625_p1, %p238_p2  ;;  %s3387_s10 = smov (!%p2450_p0, %s37_s10), %s2341_s22 }
  0x3e   : > { %p57_p7 = scmp.ne.s32.totalorder %s2321_s17, %s2317_s16  ;;  %p63_p12 = scmp.ne.s32.totalorder %s2317_s16, %s2313_s15 }
  0x3f   : > { %s3323_s28 = scalar_select %p2541_p6, 1, 0 }
  0x40   : > { %p39_p5 = scmp.ge.s32.totalorder %s3387_s10, 2  ;;  %p145_p9 = scmp.eq.s32.totalorder %s2447_s25, 15 }
  0x41   : > { %3324 = sst [smem:[#allocation24_spill]] %s3323_s28  ;;  %s50_s20 = sadd.s32 1, %s2321_s17 }
  0x42   : > { %p3325_p11 = scmp.eq.s32.totalorder %s2447_s25, 0  ;;  %s3389_s10 = smov (%p39_p5, %s3387_s10), 0 }
  0x43   : > { %3328 = sst [smem:[#allocation26_spill]] %s3389_s10  ;;  %s3329_s27 = sadd.s32 1, %s2345_s23 }
  0x44   : > { %p2564_p13 = por %p3325_p11, %p63_p12  ;;  %s3391_s27 = smov (!%p39_p5, %s3329_s27), %s2345_s23 }
  0x45   : > { %p3330_p0 = scmp.eq.s32.totalorder %s2349_s24, 0  ;;  %p2579_p4 = por %p145_p9, %p57_p7 }
  0x46   : > { %s3326_s29 = scalar_select %p2564_p13, 1, 0 }
  0x47   : > { %p2575_p3 = por %p3330_p0, %p57_p7  ;;  %p43_p1 = scmp.ge.s32.totalorder %s3391_s27, 4 }
  0x48   : > { %3327 = sst [smem:[#allocation25_spill]] %s3326_s29  ;;  %p151_p2 = scmp.eq.s32.totalorder %s1610_s30, 15 }
  0x49   : > { %s3332_s6 = scalar_select %p2579_p4, 1, 0 }
  0x4a   : > { %s46_s18 = ssub.s32 %s2341_s22, %s3389_s10  ;;  %s3304_s8 = sand.u32 1, %s2321_s17  }
  0x4b   : > { %3333 = sst [smem:[#allocation27_spill]] %s3332_s6  ;;  %s3393_s27 = smov (%p43_p1, %s3391_s27), 0 }
  0x4c   : > { %3334 = sst [smem:[#allocation28_spill]] %s3393_s27  ;;  %p2591_p5 = por %p151_p2, %p63_p12 }
  0x4d   : > { %s1614_s4 = sshll.u32 %s2341_s22, 4  ;;  %s45_s12 = ssub.s32 %s2345_s23, %s3393_s27 }
  0x4e   : > { %s3335_s9 = scalar_select %p2591_p5, 1, 0 }
  0x4f   : > { %s1613_s1 = sshll.u32 %s3304_s8, 7  ;;  %s47_s30 = sor.u32 %s46_s18, %s45_s12 }
  0x50   : > { %3336 = sst [smem:[#allocation29_spill]] %s3335_s9  ;;  %s3337_s10 = ssub.s32 %s2337_s21, %s3385_s26 }
  0x51   : > { %s75_s6 = sor.u32 %s3337_s10, %s45_s12  ;;  %p48_p7 = scmp.eq.s32.totalorder %s47_s30, 0 }
  0x52   : > { %p76_p9 = scmp.eq.s32.totalorder %s75_s6, 0  ;;  %s3338_s15 = sshll.u32 %s2345_s23, 5 }
  0x53   : > { %s181_s13 = sadd.s32 %s3338_s15, %s1614_s4  ;;  %s3339_s9 = sadd.s32 1, %s2309_s14 }
  0x54   : > { %s2606_s25 = scalar_select %p48_p7, %s2321_s17, %s50_s20  }
  0x55   : > { %s2611_s29 = scalar_select %p76_p9, %s2309_s14, %s3339_s9  }
  0x56   : > { %s1616_s22 = sshll.u32 %s181_s13, 7  ;;  %s175_s27 = scalar_lea.vmem [#allocation5], %s1613_s1 }
  0x57   : > { %s184_s16 = sshll.u32 %s175_s27, 4  ;;  %s2616_s18 = scalar_lea.hbm %s3273_s0, %s1616_s22  ;;  %s2618_s16 = int_to_ptr.vmem [resolvable:$true] %s184_s16 }
  0x58   : > { %p3340_p12 = scmp.lt.s32.totalorder %s2349_s24, 16  ;;  %s2147_s4 = scalar_lea.hbm %s2504_s3, 2048 }
  0x59   : > { %p2148_p0 = scmp.ne.s32.totalorder %s2504_s3, %s2147_s4  ;;  %s2152_s12 = scalar_lea.hbm %s3275_s2, 16384 }
  0x5a   : > { %p2624_p11 = pnand %p3340_p12, %p2575_p3  ;;  %p2153_p7 = scmp.lt.u32.totalorder %s2504_s3, %s3275_s2 }
  0x5b   : > { %p2150_p1 = pnand %p2148_p0, %p2119_p10  ;;  %p2154_p9 = scmp.lt.u32.totalorder %s2152_s12, %s2147_s4 }
  0x5c   : > { %p2156_p3 = scmp.lt.u32.totalorder %s2147_s4, %s2504_s3 }
  0x5d   : > { %p2151_p2 = pneg %p2150_p1  ;;  %p2155_p5 = por %p2154_p9, %p2153_p7 }
  0x5f   : > { %p2157_p12 = por %p2156_p3, %p2155_p5 }
  0x61   : > { %p2158_p4 = pnand %p2157_p12, %p2151_p2 }
  0x63   : > { %2161 = shalt.err (!%p2158_p4)
}
  0x64   : > { %s2162_s10 = scalar_lea.vmem %s2546_s5, 2048  ;;  %s2354_s20 = smov [#allocation10]  }
  0x65   : > { %p2163_p0 = scmp.ne.s32.totalorder %s2546_s5, %s2162_s10  ;;  %s2167_s27 = sshll.u32 %s2354_s20, 4  ;;  %s2168_s27 = int_to_ptr.vmem [resolvable:$false] %s2167_s27 }
  0x66   : > { %s2169_s11 = scalar_lea.vmem %s2168_s27, 4096  ;;  %p2170_p6 = scmp.lt.s32.totalorder %s2546_s5, %s2168_s27 }
  0x67   : > { %p2165_p1 = pnand %p2163_p0, %p2119_p10  ;;  %p2171_p7 = scmp.lt.s32.totalorder %s2169_s11, %s2162_s10 }
  0x69   : > { %p2166_p13 = pneg %p2165_p1  ;;  %p2172_p9 = por %p2171_p7, %p2170_p6 }
  0x6b   : > { %p2173_p5 = pnand %p2172_p9, %p2166_p13 }
  0x6d   : > { %2176 = shalt.err (!%p2173_p5)
}
  0x6e   : > { %s3342_s6 = smov 8   ;;  %s3343_s8 = smov 128  }
  0x6f   : > { %1898 = dma.hbm_to_vmem [thread:$0]  (!%p2495_p8), %s2504_s3, 2048, %s2546_s5, %s2508_s19, %s3343_s8, %s3343_s8, %s3342_s6  }
  0x70   : > { %s3344_s9 = sand.u32 1, %s2321_s17   ;;  %s2177_s4 = scalar_lea.hbm %s2616_s18, 2048 }
  0x71   : > { %s2657_s30 = scalar_lea.sflag [#allocation6], %s3344_s9  ;;  %p2178_p10 = scmp.ne.s32.totalorder %s2616_s18, %s2177_s4 }
  0x72   : > { %p2179_p6 = pneg %p2624_p11  ;;  %s2182_s13 = scalar_lea.hbm %s3273_s0, 16384 }
  0x73   : > { %p2183_p2 = scmp.lt.u32.totalorder %s2616_s18, %s3273_s0  ;;  %p2184_p8 = scmp.lt.u32.totalorder %s2182_s13, %s2177_s4 }
  0x74   : > { %p2180_p13 = pnand %p2179_p6, %p2178_p10  ;;  %p2186_p12 = scmp.lt.u32.totalorder %s2177_s4, %s2616_s18 }
  0x75   : > { %p2185_p3 = por %p2184_p8, %p2183_p2 }
  0x76   : > { %p2181_p4 = pneg %p2180_p13 }
  0x77   : > { %p2187_p0 = por %p2186_p12, %p2185_p3 }
  0x79   : > { %p2188_p1 = pnand %p2187_p0, %p2181_p4 }
  0x7b   : > { %2191 = shalt.err (!%p2188_p1)
}
  0x7c   : > { %s2192_s19 = scalar_lea.vmem %s2618_s16, 2048  ;;  %s2355_s5 = smov [#allocation5]  }
  0x7d   : > { %p2193_p7 = scmp.ne.s32.totalorder %s2618_s16, %s2192_s19  ;;  %s2197_s3 = sshll.u32 %s2355_s5, 4  ;;  %s2198_s3 = int_to_ptr.vmem [resolvable:$false] %s2197_s3 }
  0x7e   : > { %s2199_s28 = scalar_lea.vmem %s2198_s3, 4096  ;;  %p2200_p10 = scmp.lt.s32.totalorder %s2618_s16, %s2198_s3 }
  0x7f   : > { %p2195_p9 = pnand %p2193_p7, %p2179_p6  ;;  %p2201_p13 = scmp.lt.s32.totalorder %s2199_s28, %s2192_s19 }
  0x81   : > { %p2196_p5 = pneg %p2195_p9  ;;  %p2202_p2 = por %p2201_p13, %p2200_p10 }
  0x83   : > { %p2203_p8 = pnand %p2202_p2, %p2196_p5 }
  0x85   : > { %2206 = shalt.err (!%p2203_p8)
}
  0x86   : > { %1892 = dma.hbm_to_vmem [thread:$0]  (!%p2624_p11), %s2616_s18, 2048, %s2618_s16, %s2657_s30, %s3343_s8, %s3343_s8, %s3342_s6  }
  0x87   : > { %s3345_s10 = sld [smem:[#allocation24_spill]] }
  0x8d   : > { %p3346_p6 = scmp.ne.s32.totalorder %s3345_s10, 0 }
  0x8e   : > { %s3347_s20 = sld [smem:[#allocation17_spill]] (!%p3346_p6)  ;;  %s3348_s27 = sld [smem:[#allocation25_spill]] (!%p3346_p6) }
  0x8f   : > { %242 = sbr.rel (%p3346_p6) target bundleno = 1245 (0x4dd), region = 32 }
  0x94   : > { %s2691_s11 = sand.u32 (!%p3346_p6), 1, %s3347_s20   ;;  %p3349_p4 = scmp.ne.s32.totalorder (!%p3346_p6), %s3348_s27, 0 }
  0x95   : > { %s1626_s9 = sshll.u32 (!%p3346_p6), %s2691_s11, 7  ;;  %s245_s4 = scalar_lea.sflag (!%p3346_p6), [#allocation6], %s2691_s11 }
  0x96   : > { %s2695_s7 = scalar_lea.vmem [#allocation5], %s1626_s9 }
  0x97   : > { %2288 = dma.done.wait (%p3349_p4), %s245_s4, 2048  }
  0x98   : > { %2290 = vsyncadd (%p3349_p4), %s245_s4, 4294965248  ;;  %s3350_s15 = sld [smem:[#allocation22_spill]]  ;;  %s3351_s16 = sld [smem:[#allocation15_spill]] }
  0x99   : > { %s3352_s18 = sld [smem:[#allocation23_spill]] }
  0x9e   : > { %s253_s6 = sand.u32 1, %s3350_s15   ;;  %s255_s8 = sand.u32 1, %s3351_s16  }
  0x9f   : > { %s1627_s30 = sshll.u32 %s255_s8, 7  ;;  %s254_s1 = scalar_lea.sflag [#allocation9], %s253_s6 }
  0xa0   : > { %s2703_s13 = scalar_lea.vmem [#allocation8], %s1627_s30  ;;  %p3353_p11 = scmp.ne.s32.totalorder %s3352_s18, 0 }
  0xa2   : > { %2292 = dma.done.wait (%p3353_p11), %s254_s1, 4096  }
  0xa3   : > { %2294 = vsyncadd (%p3353_p11), %s254_s1, 4294963200  ;;  %s2709_s12 = scalar_lea.vmem [#allocation10], %s1627_s30  ;;  %s2711_s22 = scalar_lea.vmem [#allocation11], %s1626_s9 }
  0xa4   : > { %s3354_s19 = sld [smem:[#allocation18_spill]] }
  0xaa   : > { %p1630_p3 = scmp.ne.s32.totalorder %s3354_s19, 0 }
  0xab   : > { %vm307_vm0 = vcmask (!%p1630_p3), 7168   ;;  %v2356_v0 = vmov (!%p1630_p3), -1e+30   ;;  %v2357_v1 = vmov (!%p1630_p3), 0.0  }
  0xac   : > { %306 = sbr.rel (%p1630_p3) target bundleno = 196 (0xc4), region = 48  ;;  %308 = vst.msk [vmem:[#allocation2] sm:$0xff] (!%p1630_p3), %vm307_vm0, %v2356_v0  ;;  %309 = vst.msk [vmem:[#allocation2 + $0x8] sm:$0xff] (!%p1630_p3), %vm307_vm0, %v2356_v0 }
  0xad   : > { %310 = vst.msk [vmem:[#allocation2 + $0x10] sm:$0xff] (!%p1630_p3), %vm307_vm0, %v2356_v0  ;;  %311 = vst.msk [vmem:[#allocation2 + $0x18] sm:$0xff] (!%p1630_p3), %vm307_vm0, %v2356_v0 }
  0xae   : > { %312 = vst.msk [vmem:[#allocation2 + $0x20] sm:$0xff] (!%p1630_p3), %vm307_vm0, %v2356_v0  ;;  %313 = vst.msk [vmem:[#allocation2 + $0x28] sm:$0xff] (!%p1630_p3), %vm307_vm0, %v2356_v0 }
  0xaf   : > { %314 = vst.msk [vmem:[#allocation2 + $0x30] sm:$0xff] (!%p1630_p3), %vm307_vm0, %v2356_v0  ;;  %315 = vst.msk [vmem:[#allocation2 + $0x38] sm:$0xff] (!%p1630_p3), %vm307_vm0, %v2356_v0 }
  0xb0   : > { %316 = vst.msk [vmem:[#allocation2 + $0x40] sm:$0xff] (!%p1630_p3), %vm307_vm0, %v2356_v0  ;;  %317 = vst.msk [vmem:[#allocation2 + $0x48] sm:$0xff] (!%p1630_p3), %vm307_vm0, %v2356_v0 }
  0xb1   : > { %318 = vst.msk [vmem:[#allocation2 + $0x50] sm:$0xff] (!%p1630_p3), %vm307_vm0, %v2356_v0  ;;  %319 = vst.msk [vmem:[#allocation2 + $0x58] sm:$0xff] (!%p1630_p3), %vm307_vm0, %v2356_v0 }
  0xb2   : > { %320 = vst.msk [vmem:[#allocation2 + $0x60] sm:$0xff] (!%p1630_p3), %vm307_vm0, %v2356_v0  ;;  %321 = vst.msk [vmem:[#allocation2 + $0x68] sm:$0xff] (!%p1630_p3), %vm307_vm0, %v2356_v0 }
  0xb3   : > { %322 = vst.msk [vmem:[#allocation2 + $0x70] sm:$0xff] %vm307_vm0, %v2356_v0  ;;  %323 = vst.msk [vmem:[#allocation2 + $0x78] sm:$0xff] %vm307_vm0, %v2356_v0 }
  0xb4   : > { %324 = vst.msk [vmem:[#allocation3] sm:$0xff] %vm307_vm0, %v2357_v1  ;;  %325 = vst.msk [vmem:[#allocation3 + $0x8] sm:$0xff] %vm307_vm0, %v2357_v1 }
  0xb5   : > { %326 = vst.msk [vmem:[#allocation3 + $0x10] sm:$0xff] %vm307_vm0, %v2357_v1  ;;  %327 = vst.msk [vmem:[#allocation3 + $0x18] sm:$0xff] %vm307_vm0, %v2357_v1 }
  0xb6   : > { %328 = vst.msk [vmem:[#allocation3 + $0x20] sm:$0xff] %vm307_vm0, %v2357_v1  ;;  %329 = vst.msk [vmem:[#allocation3 + $0x28] sm:$0xff] %vm307_vm0, %v2357_v1 }
  0xb7   : > { %330 = vst.msk [vmem:[#allocation3 + $0x30] sm:$0xff] %vm307_vm0, %v2357_v1  ;;  %331 = vst.msk [vmem:[#allocation3 + $0x38] sm:$0xff] %vm307_vm0, %v2357_v1 }
  0xb8   : > { %332 = vst.msk [vmem:[#allocation3 + $0x40] sm:$0xff] %vm307_vm0, %v2357_v1  ;;  %333 = vst.msk [vmem:[#allocation3 + $0x48] sm:$0xff] %vm307_vm0, %v2357_v1 }
  0xb9   : > { %334 = vst.msk [vmem:[#allocation3 + $0x50] sm:$0xff] %vm307_vm0, %v2357_v1  ;;  %335 = vst.msk [vmem:[#allocation3 + $0x58] sm:$0xff] %vm307_vm0, %v2357_v1 }
  0xba   : > { %336 = vst.msk [vmem:[#allocation3 + $0x60] sm:$0xff] %vm307_vm0, %v2357_v1  ;;  %337 = vst.msk [vmem:[#allocation3 + $0x68] sm:$0xff] %vm307_vm0, %v2357_v1 }
  0xbb   : > { %338 = vst.msk [vmem:[#allocation3 + $0x70] sm:$0xff] %vm307_vm0, %v2357_v1  ;;  %339 = vst.msk [vmem:[#allocation3 + $0x78] sm:$0xff] %vm307_vm0, %v2357_v1 }
  0xbc   : > { %340 = vst [vmem:[#allocation4] sm:$0xff] %v2357_v1  ;;  %341 = vst [vmem:[#allocation4 + $0x8] sm:$0xff] %v2357_v1 }
  0xbd   : > { %342 = vst [vmem:[#allocation4 + $0x10] sm:$0xff] %v2357_v1  ;;  %343 = vst [vmem:[#allocation4 + $0x18] sm:$0xff] %v2357_v1 }
  0xbe   : > { %344 = vst [vmem:[#allocation4 + $0x20] sm:$0xff] %v2357_v1  ;;  %345 = vst [vmem:[#allocation4 + $0x28] sm:$0xff] %v2357_v1 }
  0xbf   : > { %346 = vst [vmem:[#allocation4 + $0x30] sm:$0xff] %v2357_v1  ;;  %347 = vst [vmem:[#allocation4 + $0x38] sm:$0xff] %v2357_v1 }
  0xc0   : > { %348 = vst [vmem:[#allocation4 + $0x40] sm:$0xff] %v2357_v1  ;;  %349 = vst [vmem:[#allocation4 + $0x48] sm:$0xff] %v2357_v1 }
  0xc1   : > { %350 = vst [vmem:[#allocation4 + $0x50] sm:$0xff] %v2357_v1  ;;  %351 = vst [vmem:[#allocation4 + $0x58] sm:$0xff] %v2357_v1 }
  0xc2   : > { %352 = vst [vmem:[#allocation4 + $0x60] sm:$0xff] %v2357_v1  ;;  %353 = vst [vmem:[#allocation4 + $0x68] sm:$0xff] %v2357_v1 }
  0xc3   : > { %354 = vst [vmem:[#allocation4 + $0x70] sm:$0xff] %v2357_v1  ;;  %355 = vst [vmem:[#allocation4 + $0x78] sm:$0xff] %v2357_v1 }
  0xc4 PF: > { %s3355_s5 = sld [smem:[#allocation18_spill]]  ;;  %s3356_s3 = sld [smem:[#allocation19_spill]] }
  0xca   : > { %s1631_s28 = sshll.u32 %s3355_s5, 7  ;;  %s1632_s10 = sshll.u32 %s3356_s3, 7 }
  0xcb   : > { %s358_s20 = sadd.s32 127, %s1632_s10 }
  0xcc   : > { %p1633_p12 = scmp.gt.s32.totalorder %s1631_s28, %s358_s20 }
  0xcd   : > { %v379_v2 = vld [vmem:[%s2703_s13] sm:$0xff] (!%p1633_p12)  ;;  %v380_v3 = vld [vmem:[%s2703_s13 + $0x8] sm:$0xff] (!%p1633_p12)  ;;  %v381_v4 = vld [vmem:[%s2703_s13 + $0x10] sm:$0xff] (!%p1633_p12)  ;;  %v572_v42 = vlaneseq (!%p1633_p12)  ;;  %v2788_v45 = vstv (!%p1633_p12), %s1632_s10 }
  0xce   : > { %362 = sbr.rel (%p1633_p12) target bundleno = 1036 (0x40c), region = 52  ;;  %v1817_v5 = vpack.c.bf16 (!%p1633_p12), %v380_v3, %v379_v2  ;;  %v382_v6 = vld [vmem:[%s2703_s13 + $0x18] sm:$0xff] (!%p1633_p12)  ;;  %v363_v8 = vld [vmem:[%s2695_s7] sm:$0xff] (!%p1633_p12)  ;;  %v384_v10 = vld [vmem:[%s2703_s13 + $0x28] sm:$0xff] (!%p1633_p12)  ;;  %v608_v46 = vstv (!%p1633_p12), %s1631_s28 }
  0xcf   : > { %v1821_v7 = vpack.c.bf16 (!%p1633_p12), %v382_v6, %v381_v4  ;;  %v383_v9 = vld [vmem:[%s2703_s13 + $0x20] sm:$0xff] (!%p1633_p12)  ;;  %1737 = vmatprep.mubr.f32.mxu0 (!%p1633_p12), %v363_v8  ;;  %v385_v12 = vld [vmem:[%s2703_s13 + $0x30] sm:$0xff] (!%p1633_p12)  ;;  %v386_v13 = vld [vmem:[%s2703_s13 + $0x38] sm:$0xff] (!%p1633_p12)  ;;  %v2784_v43 = vshrl.u32 (!%p1633_p12), %v572_v42, 7  ;;  %v607_v44 = vand.u32 (!%p1633_p12), 127, %v572_v42 }
  0xd0   : > { %1818 = vmatprep.subr.bf16.mxu0 (!%p1633_p12), %v1817_v5  ;;  %v1825_v11 = vpack.c.bf16 (!%p1633_p12), %v384_v10, %v383_v9  ;;  %v1829_v14 = vpack.c.bf16 (!%p1633_p12), %v386_v13, %v385_v12  ;;  %v387_v15 = vld [vmem:[%s2703_s13 + $0x40] sm:$0xff] (!%p1633_p12)  ;;  %v388_v16 = vld [vmem:[%s2703_s13 + $0x48] sm:$0xff] (!%p1633_p12)  ;;  %v389_v18 = vld [vmem:[%s2703_s13 + $0x50] sm:$0xff] (!%p1633_p12) }
  0xd1   : > { %1820 = vmatpush3.bf16.xpose.msra.mxu0 (!%p1633_p12), %v1817_v5  ;;  %v1833_v17 = vpack.c.bf16 (!%p1633_p12), %v388_v16, %v387_v15  ;;  %v390_v19 = vld [vmem:[%s2703_s13 + $0x58] sm:$0xff] (!%p1633_p12)  ;;  %v391_v21 = vld [vmem:[%s2703_s13 + $0x60] sm:$0xff] (!%p1633_p12)  ;;  %v392_v22 = vld [vmem:[%s2703_s13 + $0x68] sm:$0xff] (!%p1633_p12)  ;;  %v576_v47 = vadd.s32 (!%p1633_p12), 24, %v2784_v43  ;;  %v590_v48 = vadd.s32 (!%p1633_p12), %v2788_v45, %v2784_v43  ;;  %v2795_v49 = vadd.s32 (!%p1633_p12), %v608_v46, %v607_v44 }
  0xd2   : > { %1822 = vmatprep.subr.bf16.mxu0 (!%p1633_p12), %v1821_v7  ;;  %v1837_v20 = vpack.c.bf16 (!%p1633_p12), %v390_v19, %v389_v18  ;;  %v1841_v23 = vpack.c.bf16 (!%p1633_p12), %v392_v22, %v391_v21  ;;  %v393_v24 = vld [vmem:[%s2703_s13 + $0x70] sm:$0xff] (!%p1633_p12)  ;;  %v394_v25 = vld [vmem:[%s2703_s13 + $0x78] sm:$0xff] (!%p1633_p12)  ;;  %v364_v27 = vld [vmem:[%s2695_s7 + $0x8] sm:$0xff] (!%p1633_p12)  ;;  %v574_v50 = vadd.s32 (!%p1633_p12), 8, %v2784_v43  ;;  %v575_v51 = vadd.s32 (!%p1633_p12), 16, %v2784_v43 }
  0xd3   : > { %v1845_v26 = vpack.c.bf16 (!%p1633_p12), %v394_v25, %v393_v24  ;;  %v365_v28 = vld [vmem:[%s2695_s7 + $0x10] sm:$0xff] (!%p1633_p12)  ;;  %v366_v29 = vld [vmem:[%s2695_s7 + $0x18] sm:$0xff] (!%p1633_p12)  ;;  %v367_v30 = vld [vmem:[%s2695_s7 + $0x20] sm:$0xff] (!%p1633_p12)  ;;  %v593_v53 = vadd.s32 (!%p1633_p12), %v2788_v45, %v576_v47  ;;  %vm610_vm1 = vcmp.le.s32.totalorder (!%p1633_p12), %v2795_v49, %v590_v48  ;;  %v577_v56 = vadd.s32 (!%p1633_p12), 32, %v2784_v43 }
  0xd4   : > { %v368_v31 = vld [vmem:[%s2695_s7 + $0x28] sm:$0xff] (!%p1633_p12)  ;;  %v369_v32 = vld [vmem:[%s2695_s7 + $0x30] sm:$0xff] (!%p1633_p12)  ;;  %v370_v33 = vld [vmem:[%s2695_s7 + $0x38] sm:$0xff] (!%p1633_p12)  ;;  %v591_v55 = vadd.s32 (!%p1633_p12), %v2788_v45, %v574_v50  ;;  %v592_v58 = vadd.s32 (!%p1633_p12), %v2788_v45, %v575_v51  ;;  %v578_v59 = vadd.s32 (!%p1633_p12), 40, %v2784_v43  ;;  %v579_v2 = vadd.s32 (!%p1633_p12), 48, %v2784_v43 }
  0xd5   : > { %v371_v34 = vld [vmem:[%s2695_s7 + $0x40] sm:$0xff]  ;;  %v372_v35 = vld [vmem:[%s2695_s7 + $0x48] sm:$0xff]  ;;  %v373_v36 = vld [vmem:[%s2695_s7 + $0x50] sm:$0xff]  ;;  %vm613_vm2 = vcmp.le.s32.totalorder %v2795_v49, %v593_v53  ;;  %v594_v1 = vadd.s32 %v2788_v45, %v577_v56  ;;  %v580_v5 = vadd.s32 56, %v2784_v43  ;;  %v581_v9 = vadd.s32 64, %v2784_v43 }
  0xd6   : > { %v374_v37 = vld [vmem:[%s2695_s7 + $0x58] sm:$0xff]  ;;  %v375_v38 = vld [vmem:[%s2695_s7 + $0x60] sm:$0xff]  ;;  %v376_v39 = vld [vmem:[%s2695_s7 + $0x68] sm:$0xff]  ;;  %vm611_vm3 = vcmp.le.s32.totalorder %v2795_v49, %v591_v55  ;;  %vm612_vm4 = vcmp.le.s32.totalorder %v2795_v49, %v592_v58  ;;  %v595_v4 = vadd.s32 %v2788_v45, %v578_v59  ;;  %v596_v13 = vadd.s32 %v2788_v45, %v579_v2 }
  0xd7   : > { %v377_v40 = vld [vmem:[%s2695_s7 + $0x70] sm:$0xff]  ;;  %v378_v41 = vld [vmem:[%s2695_s7 + $0x78] sm:$0xff]  ;;  %vm614_vm5 = vcmp.le.s32.totalorder %v2795_v49, %v594_v1  ;;  %v597_v15 = vadd.s32 %v2788_v45, %v580_v5  ;;  %v582_v16 = vadd.s32 72, %v2784_v43  ;;  %v598_v19 = vadd.s32 %v2788_v45, %v581_v9  ;;  %v395_v2 = vld [vmem:[%s2709_s12] sm:$0xff] }
  0xd8   : > { %vm615_vm6 = vcmp.le.s32.totalorder %v2795_v49, %v595_v4  ;;  %vm616_vm7 = vcmp.le.s32.totalorder %v2795_v49, %v596_v13  ;;  %v588_v50 = vadd.s32 120, %v2784_v43  ;;  %v397_v4 = vld [vmem:[%s2709_s12 + $0x10] sm:$0xff] }
  0xd9   : > { %1824 = vmatpush3.bf16.xpose.msra.mxu0 %v1821_v7  ;;  %vm617_vm8 = vcmp.le.s32.totalorder %v2795_v49, %v597_v15  ;;  %v599_v25 = vadd.s32 %v2788_v45, %v582_v16  ;;  %vm618_vm9 = vcmp.le.s32.totalorder %v2795_v49, %v598_v19  ;;  %v401_v13 = vld [vmem:[%s2709_s12 + $0x30] sm:$0xff]  ;;  %v2898_v16 = vld [vmem:[#allocation2] sm:$0xff] }
  0xda   : > { %1826 = vmatprep.subr.bf16.mxu0 %v1825_v11 }
  0xdb   : > { %vm619_vm10 = vcmp.le.s32.totalorder %v2795_v49, %v599_v25  ;;  %v404_v25 = vld [vmem:[%s2709_s12 + $0x48] sm:$0xff] }
  0xe1   : > { %1828 = vmatpush3.bf16.xpose.msra.mxu0 %v1825_v11 }
  0xe2   : > { %1830 = vmatprep.subr.bf16.mxu0 %v1829_v14 }
  0xe9   : > { %1832 = vmatpush3.bf16.xpose.msra.mxu0 %v1829_v14 }
  0xea   : > { %1834 = vmatprep.subr.bf16.mxu0 %v1833_v17 }
  0xf1   : > { %1836 = vmatpush3.bf16.xpose.msra.mxu0 %v1833_v17 }
  0xf2   : > { %1838 = vmatprep.subr.bf16.mxu0 %v1837_v20 }
  0xf9   : > { %1840 = vmatpush3.bf16.xpose.msra.mxu0 %v1837_v20 }
  0xfa   : > { %1842 = vmatprep.subr.bf16.mxu0 %v1841_v23 }
 0x101   : > { %1844 = vmatpush3.bf16.xpose.msra.mxu0 %v1841_v23  ;;  %v583_v23 = vadd.s32 80, %v2784_v43 }
 0x102   : > { %1846 = vmatprep.subr.bf16.mxu0 %v1845_v26 }
 0x109   : > { %1848 = vmatpush3.bf16.xpose.msra.mxu0 %v1845_v26  ;;  %v584_v26 = vadd.s32 88, %v2784_v43 }
 0x110   : > { %1738 = vmatmul.mubr.f32.vlgmr.msra.gmra.mrb[0].mxu0 %v364_v27 }
 0x111   : > { %1740 = vmatprep.mubr.f32.mxu0 %v365_v28 }
 0x114   : > { %1741 = vmatmul.mubr.f32.gmra.mrb[2].mxu0 %v366_v29 }
 0x115   : > { %1743 = vmatprep.mubr.f32.mxu0 %v367_v30 }
 0x118   : > { %1744 = vmatmul.mubr.f32.gmra.mrb[4].mxu0 %v368_v31 }
 0x119   : > { %1746 = vmatprep.mubr.f32.mxu0 %v369_v32  ;;  %v600_v32 = vadd.s32 %v2788_v45, %v583_v23 }
 0x11b   : > { %vm620_vm11 = vcmp.le.s32.totalorder %v2795_v49, %v600_v32  ;;  %v2918_v32 = vld [vmem:[#allocation2 + $0x10] sm:$0xff] }
 0x11c   : > { %1747 = vmatmul.mubr.f32.gmra.mrb[6].mxu0 %v370_v33  ;;  %v585_v33 = vadd.s32 96, %v2784_v43 }
 0x11d   : > { %1749 = vmatprep.mubr.f32.mxu0 %v371_v34 }
 0x11e   : > { %v602_v46 = vadd.s32 %v2788_v45, %v585_v33  ;;  %v2922_v33 = vld [vmem:[#allocation2 + $0x20] sm:$0xff] }
 0x120   : > { %1750 = vmatmul.mubr.f32.gmra.mrb[8].mxu0 %v372_v35  ;;  %v601_v35 = vadd.s32 %v2788_v45, %v584_v26  ;;  %vm622_vm13 = vcmp.le.s32.totalorder %v2795_v49, %v602_v46  ;;  %v2939_v46 = vld [vmem:[#allocation2 + $0x30] sm:$0xff] }
 0x121   : > { %1752 = vmatprep.mubr.f32.mxu0 %v373_v36  ;;  %v586_v36 = vadd.s32 104, %v2784_v43 }
 0x122   : > { %vm621_vm12 = vcmp.le.s32.totalorder %v2795_v49, %v601_v35  ;;  %v405_v35 = vld [vmem:[%s2709_s12 + $0x50] sm:$0xff] }
 0x123   : > { %v603_v48 = vadd.s32 %v2788_v45, %v586_v36  ;;  %v406_v36 = vld [vmem:[%s2709_s12 + $0x58] sm:$0xff] }
 0x124   : > { %1753 = vmatmul.mubr.f32.gmra.mrb[10].mxu0 %v374_v37 }
 0x125   : > { %1755 = vmatprep.mubr.f32.mxu0 %v375_v38  ;;  %vm623_vm14 = vcmp.le.s32.totalorder %v2795_v49, %v603_v48  ;;  %v407_v48 = vld [vmem:[%s2709_s12 + $0x60] sm:$0xff] }
 0x128   : > { %1756 = vmatmul.mubr.f32.gmra.mrb[12].mxu0 %v376_v39  ;;  %v587_v39 = vadd.s32 112, %v2784_v43  ;;  %v605_v43 = vadd.s32 %v2788_v45, %v588_v50  ;;  %v408_v50 = vld [vmem:[%s2709_s12 + $0x68] sm:$0xff] }
 0x129   : > { %1758 = vmatprep.mubr.f32.mxu0 %v377_v40  ;;  %v2358_v40 = vmov 0  }
 0x12a   : > { %2017 = vset.pattern.permute.xlu0 %v2358_v40  ;;  %2018 = vset.pattern.permute.xlu1 %v2358_v40  ;;  %v604_v56 = vadd.s32 %v2788_v45, %v587_v39  ;;  %vm625_vm0 = vcmp.le.s32.totalorder %v2795_v49, %v605_v43  ;;  %v1869_v40 = vpack.c.bf16 %v406_v36, %v405_v35  ;;  %v2953_v43 = vld [vmem:[#allocation2 + $0x40] sm:$0xff] }
 0x12c   : > { %1759 = vmatmul.mubr.f32.gmra.mrb[14].mxu0 %v378_v41  ;;  %vm624_vm15 = vcmp.le.s32.totalorder %v2795_v49, %v604_v56  ;;  %v399_v49 = vld [vmem:[%s2709_s12 + $0x20] sm:$0xff]  ;;  %v2947_v56 = vld [vmem:[#allocation2 + $0x38] sm:$0xff] }
 0x1e3   : > { %v1739_v52 = vpop.f32.mrb[0].mxu0 }
 0x1e4   : > { %v477_v54 = vpop.f32.mrb[1].mxu0  ;;  %v557_v60 = vmul.f32 0.088388346, %v1739_v52 }
 0x1e5   : > { %v556_v57 = vmul.f32 0.088388346, %v477_v54 }
 0x1e6   : > { %v2818_v7 = vsel %vm611_vm3, %v557_v60, -1e+30 }
 0x1e7   : > { %v1742_v61 = vpop.f32.mrb[2].mxu0  ;;  %v2805_v62 = vsel %vm610_vm1, %v556_v57, -1e+30  ;;  %vm962_vm1 = vcmask 7168  }
 0x1e8   : > { %v559_v63 = vmul.f32 0.088388346, %v1742_v61  ;;  %658 = vmax.xlane.f32.xlu0 %v2805_v62  ;;  %v487_v0 = vpop.f32.mrb[3].mxu0 }
 0x1e9   : > { %v558_v3 = vmul.f32 0.088388346, %v487_v0 }
 0x1ea   : > { %v2815_v6 = vsel %vm613_vm2, %v559_v63, -1e+30 }
 0x1eb   : > { %664 = vmax.xlane.f32.xlu1 %v2815_v6  ;;  %v1745_v8 = vpop.f32.mrb[4].mxu0  ;;  %v2822_v10 = vsel %vm612_vm4, %v558_v3, -1e+30  ;;  %v396_v3 = vld [vmem:[%s2709_s12 + $0x8] sm:$0xff] }
 0x1ec   : > { %660 = vmax.xlane.f32.xlu0 %v2818_v7  ;;  %v561_v11 = vmul.f32 0.088388346, %v1745_v8  ;;  %v497_v12 = vpop.f32.mrb[5].mxu0  ;;  %v1849_v5 = vpack.c.bf16 %v396_v3, %v395_v2  ;;  %v398_v8 = vld [vmem:[%s2709_s12 + $0x18] sm:$0xff] }
 0x1ed   : > { %v560_v14 = vmul.f32 0.088388346, %v497_v12  ;;  %v1853_v9 = vpack.c.bf16 %v398_v8, %v397_v4  ;;  %v651_v4 = vld [vmem:[#allocation2 + $0x48] sm:$0xff]  ;;  %v2965_v8 = vld [vmem:[#allocation2 + $0x50] sm:$0xff] }
 0x1ee   : > { %v2833_v20 = vsel %vm615_vm6, %v561_v11, -1e+30  ;;  %v400_v11 = vld [vmem:[%s2709_s12 + $0x28] sm:$0xff]  ;;  %1850 = vmatprep.subr.bf16.mxu1 %v1849_v5 }
 0x1ef   : > { %662 = vmax.xlane.f32.xlu1 %v2822_v10  ;;  %v1748_v17 = vpop.f32.mrb[6].mxu0  ;;  %v2830_v18 = vsel %vm614_vm5, %v560_v14, -1e+30  ;;  %1852 = vmatpush3.bf16.msra.mxu1 %v1849_v5  ;;  %v1857_v12 = vpack.c.bf16 %v400_v11, %v399_v49  ;;  %v402_v14 = vld [vmem:[%s2709_s12 + $0x38] sm:$0xff] }
 0x1f0   : > { %v563_v21 = vmul.f32 0.088388346, %v1748_v17  ;;  %v507_v22 = vpop.f32.mrb[7].mxu0  ;;  %666 = vmax.xlane.f32.xlu0 %v2830_v18  ;;  %1854 = vmatprep.subr.bf16.mxu1 %v1853_v9  ;;  %v1861_v15 = vpack.c.bf16 %v402_v14, %v401_v13  ;;  %v653_v13 = vld [vmem:[#allocation2 + $0x58] sm:$0xff] }
 0x1f1   : > { %v562_v24 = vmul.f32 0.088388346, %v507_v22  ;;  %v2905_v22 = vld [vmem:[#allocation2 + $0x8] sm:$0xff] }
 0x1f2   : > { %v2845_v29 = vsel %vm617_vm8, %v563_v21, -1e+30  ;;  %v2903_v21 = vld [vmem:[#allocation2 + $0x18] sm:$0xff] }
 0x1f3   : > { %668 = vmax.xlane.f32.xlu1 %v2833_v20  ;;  %v1751_v27 = vpop.f32.mrb[8].mxu0  ;;  %v2842_v28 = vsel %vm616_vm7, %v562_v24, -1e+30  ;;  %1856 = vmatpush3.bf16.msra.mxu1 %v1853_v9  ;;  %v403_v24 = vld [vmem:[%s2709_s12 + $0x40] sm:$0xff] }
 0x1f4   : > { %v565_v30 = vmul.f32 0.088388346, %v1751_v27  ;;  %v517_v31 = vpop.f32.mrb[9].mxu0  ;;  %670 = vmax.xlane.f32.xlu0 %v2842_v28  ;;  %1858 = vmatprep.subr.bf16.mxu1 %v1857_v12 }
 0x1f5   : > { %v564_v34 = vmul.f32 0.088388346, %v517_v31 }
 0x1f6   : > { %v2857_v41 = vsel %vm619_vm10, %v565_v30, -1e+30  ;;  %v1865_v30 = vpack.c.bf16 %v404_v25, %v403_v24  ;;  %v655_v25 = vld [vmem:[#allocation2 + $0x68] sm:$0xff] }
 0x1f7   : > { %672 = vmax.xlane.f32.xlu1 %v2845_v29  ;;  %v1754_v37 = vpop.f32.mrb[10].mxu0  ;;  %v2854_v38 = vsel %vm618_vm9, %v564_v34, -1e+30  ;;  %1860 = vmatpush3.bf16.msra.mxu1 %v1857_v12 }
 0x1f8   : > { %v567_v42 = vmul.f32 0.088388346, %v1754_v37  ;;  %v527_v44 = vpop.f32.mrb[11].mxu0  ;;  %674 = vmax.xlane.f32.xlu0 %v2854_v38  ;;  %1862 = vmatprep.subr.bf16.mxu1 %v1861_v15 }
 0x1f9   : > { %v566_v47 = vmul.f32 0.088388346, %v527_v44 }
 0x1fa   : > { %v2868_v53 = vsel %vm621_vm12, %v567_v42, -1e+30  ;;  %v2932_v42 = vld [vmem:[#allocation2 + $0x28] sm:$0xff] }
 0x1fb   : > { %676 = vmax.xlane.f32.xlu1 %v2857_v41  ;;  %v1757_v51 = vpop.f32.mrb[12].mxu0  ;;  %v2866_v52 = vsel %vm620_vm11, %v566_v47, -1e+30  ;;  %1864 = vmatpush3.bf16.msra.mxu1 %v1861_v15  ;;  %v2975_v15 = vld [vmem:[#allocation2 + $0x60] sm:$0xff] }
 0x1fc   : > { %v569_v54 = vmul.f32 0.088388346, %v1757_v51  ;;  %v537_v55 = vpop.f32.mrb[13].mxu0  ;;  %678 = vmax.xlane.f32.xlu0 %v2866_v52  ;;  %1866 = vmatprep.subr.bf16.mxu1 %v1865_v30 }
 0x1fd   : > { %v568_v57 = vmul.f32 0.088388346, %v537_v55  ;;  %v1873_v55 = vpack.c.bf16 %v408_v50, %v407_v48 }
 0x1fe   : > { %v2878_v60 = vsel %vm623_vm14, %v569_v54, -1e+30 }
 0x1ff   : > { %680 = vmax.xlane.f32.xlu1 %v2868_v53  ;;  %v1760_v58 = vpop.f32.mrb[14].mxu0  ;;  %v2876_v59 = vsel %vm622_vm13, %v568_v57, -1e+30  ;;  %1868 = vmatpush3.bf16.msra.mxu1 %v1865_v30  ;;  %v2986_v30 = vld [vmem:[#allocation2 + $0x70] sm:$0xff] }
 0x200   : > { %v571_v61 = vmul.f32 0.088388346, %v1760_v58  ;;  %682 = vmax.xlane.f32.xlu0 %v2876_v59  ;;  %v547_v63 = vpop.f32.mrb[15].mxu0  ;;  %1870 = vmatprep.subr.bf16.mxu1 %v1869_v40 }
 0x201   : > { %v570_v45 = vmul.f32 0.088388346, %v547_v63  ;;  %v410_v63 = vld [vmem:[%s2709_s12 + $0x78] sm:$0xff] }
 0x202   : > { %v2886_v1 = vsel %vm625_vm0, %v571_v61, -1e+30  ;;  %v409_v61 = vld [vmem:[%s2709_s12 + $0x70] sm:$0xff] }
 0x203   : > { %684 = vmax.xlane.f32.xlu1 %v2878_v60  ;;  %v2884_v0 = vsel %vm624_vm15, %v570_v45, -1e+30  ;;  %1872 = vmatpush3.bf16.msra.mxu1 %v1869_v40  ;;  %v1877_v3 = vpack.c.bf16 %v410_v63, %v409_v61 }
 0x204   : > { %686 = vmax.xlane.f32.xlu0 %v2884_v0  ;;  %1874 = vmatprep.subr.bf16.mxu1 %v1873_v55 }
 0x207   : > { %688 = vmax.xlane.f32.xlu1 %v2886_v1  ;;  %1876 = vmatpush3.bf16.msra.mxu1 %v1873_v55 }
 0x208   : > { %1878 = vmatprep.subr.bf16.mxu1 %v1877_v3 }
 0x20b   : > { %1880 = vmatpush3.bf16.msra.mxu1 %v1877_v3 }
 0x275   : > { %v659_v17 = vpop.xlane.xlu0 %658 }
 0x276   : > { %v2901_v19 = vmax.f32 %v2898_v16, %v659_v17 }
 0x278   : > { %1268 = vst.msk [vmem:[#allocation2] sm:$0xff] %vm962_vm1, %v2901_v19  ;;  %v665_v23 = vpop.xlane.xlu1 %664  ;;  %756 = vperm.xlu0 %2017, %v2901_v19   ;;  %v706_v9 = vsub.f32 %v2898_v16, %v2901_v19 }
 0x279   : > { %v2913_v26 = vmax.f32 %v2903_v21, %v665_v23  ;;  %v661_v27 = vpop.xlane.xlu0 %660 }
 0x27a   : > { %v2916_v31 = vmax.f32 %v2905_v22, %v661_v27  ;;  %v722_v17 = vmul.f32 1.442695, %v706_v9 }
 0x27b   : > { %1271 = vst.msk [vmem:[#allocation2 + $0x18] sm:$0xff] %vm962_vm1, %v2913_v26  ;;  %v709_v16 = vsub.f32 %v2903_v21, %v2913_v26 }
 0x27c   : > { %1269 = vst.msk [vmem:[#allocation2 + $0x8] sm:$0xff] %vm962_vm1, %v2916_v31  ;;  %v663_v34 = vpop.xlane.xlu1 %662  ;;  %761 = vperm.xlu1 %2018, %v2916_v31   ;;  %2019 = vpow2.f32 %v722_v17 }
 0x27d   : > { %v2930_v37 = vmax.f32 %v2918_v32, %v663_v34  ;;  %v667_v39 = vpop.xlane.xlu0 %666  ;;  %v728_v34 = vmul.f32 1.442695, %v709_v16 }
 0x27e   : > { %v2935_v44 = vmax.f32 %v2922_v33, %v667_v39  ;;  %v2991_v39 = vld [vmem:[#allocation2 + $0x78] sm:$0xff] }
 0x27f   : > { %1270 = vst.msk [vmem:[#allocation2 + $0x10] sm:$0xff] %vm962_vm1, %v2930_v37  ;;  %2021 = vpow2.f32 %v728_v34 }
 0x280   : > { %v669_v47 = vpop.xlane.xlu1 %668  ;;  %771 = vperm.xlu1 %2018, %v2913_v26   ;;  %1272 = vst.msk [vmem:[#allocation2 + $0x20] sm:$0xff] %vm962_vm1, %v2935_v44  ;;  %v710_v3 = vsub.f32 %v2922_v33, %v2935_v44 }
 0x281   : > { %v695_v51 = vmax.f32 %v2932_v42, %v669_v47  ;;  %v671_v54 = vpop.xlane.xlu0 %670 }
 0x282   : > { %v2950_v57 = vmax.f32 %v2939_v46, %v671_v54  ;;  %v730_v9 = vmul.f32 1.442695, %v710_v3 }
 0x283   : > { %1273 = vst.msk [vmem:[#allocation2 + $0x28] sm:$0xff] %vm962_vm1, %v695_v51  ;;  %v711_v21 = vsub.f32 %v2932_v42, %v695_v51 }
 0x284   : > { %v673_v58 = vpop.xlane.xlu1 %672  ;;  %766 = vperm.xlu1 %2018, %v2930_v37   ;;  %1274 = vst.msk [vmem:[#allocation2 + $0x30] sm:$0xff] %vm962_vm1, %v2950_v57 }
 0x285   : > { %v697_v45 = vmax.f32 %v2947_v56, %v673_v58  ;;  %v675_v2 = vpop.xlane.xlu0 %674  ;;  %v732_v47 = vmul.f32 1.442695, %v711_v21 }
 0x286   : > { %v2962_v5 = vmax.f32 %v2953_v43, %v675_v2 }
 0x287   : > { %1275 = vst.msk [vmem:[#allocation2 + $0x38] sm:$0xff] %vm962_vm1, %v697_v45  ;;  %v713_v48 = vsub.f32 %v2947_v56, %v697_v45  ;;  %2023 = vpow2.f32 %v732_v47 }
 0x288   : > { %v677_v49 = vpop.xlane.xlu1 %676  ;;  %781 = vperm.xlu1 %2018, %v695_v51   ;;  %1276 = vst.msk [vmem:[#allocation2 + $0x40] sm:$0xff] %vm962_vm1, %v2962_v5  ;;  %v707_v51 = vsub.f32 %v2905_v22, %v2916_v31  ;;  %v708_v22 = vsub.f32 %v2918_v32, %v2930_v37  ;;  %v3016_v31 = vpop.eup %2019 }
 0x289   : > { %v699_v11 = vmax.f32 %v651_v4, %v677_v49  ;;  %v679_v12 = vpop.xlane.xlu0 %678  ;;  %v736_v56 = vmul.f32 1.442695, %v713_v48  ;;  %v712_v49 = vsub.f32 %v2939_v46, %v2950_v57 }
 0x28a   : > { %v2972_v14 = vmax.f32 %v2965_v8, %v679_v12  ;;  %v724_v61 = vmul.f32 1.442695, %v707_v51  ;;  %v726_v2 = vmul.f32 1.442695, %v708_v22  ;;  %v714_v12 = vsub.f32 %v2953_v43, %v2962_v5 }
 0x28b   : > { %1277 = vst.msk [vmem:[#allocation2 + $0x48] sm:$0xff] %vm962_vm1, %v699_v11  ;;  %801 = vperm.xlu0 %2017, %v699_v11   ;;  %v715_v58 = vsub.f32 %v651_v4, %v699_v11  ;;  %2025 = vpow2.f32 %v736_v56  ;;  %v3022_v4 = vpop.eup %2021 }
 0x28c   : > { %v681_v19 = vpop.xlane.xlu1 %680  ;;  %776 = vperm.xlu1 %2018, %v2935_v44   ;;  %1278 = vst.msk [vmem:[#allocation2 + $0x50] sm:$0xff] %vm962_vm1, %v2972_v14  ;;  %2027 = vpow2.f32 %v724_v61  ;;  %v734_v44 = vmul.f32 1.442695, %v712_v49  ;;  %v738_v46 = vmul.f32 1.442695, %v714_v12 }
 0x28d   : > { %v701_v23 = vmax.f32 %v653_v13, %v681_v19  ;;  %v683_v24 = vpop.xlane.xlu0 %682  ;;  %v740_v63 = vmul.f32 1.442695, %v715_v58 }
 0x28e   : > { %v2983_v27 = vmax.f32 %v2975_v15, %v683_v24 }
 0x28f   : > { %1279 = vst.msk [vmem:[#allocation2 + $0x58] sm:$0xff] %vm962_vm1, %v701_v23  ;;  %811 = vperm.xlu0 %2017, %v701_v23   ;;  %2029 = vpow2.f32 %v740_v63 }
 0x290   : > { %v685_v26 = vpop.xlane.xlu1 %684  ;;  %791 = vperm.xlu1 %2018, %v697_v45   ;;  %1280 = vst.msk [vmem:[#allocation2 + $0x60] sm:$0xff] %vm962_vm1, %v2983_v27  ;;  %v717_v45 = vsub.f32 %v653_v13, %v701_v23  ;;  %2031 = vpow2.f32 %v726_v2 }
 0x291   : > { %v703_v35 = vmax.f32 %v655_v25, %v685_v26  ;;  %v687_v36 = vpop.xlane.xlu0 %686  ;;  %v3028_v11 = vpop.eup %2023 }
 0x292   : > { %v2994_v40 = vmax.f32 %v2986_v30, %v687_v36  ;;  %v744_v32 = vmul.f32 1.442695, %v717_v45 }
 0x293   : > { %1281 = vst.msk [vmem:[#allocation2 + $0x68] sm:$0xff] %vm962_vm1, %v703_v35  ;;  %821 = vperm.xlu0 %2017, %v703_v35   ;;  %v719_v37 = vsub.f32 %v655_v25, %v703_v35 }
 0x294   : > { %786 = vperm.xlu1 %2018, %v2950_v57   ;;  %v689_v42 = vpop.xlane.xlu1 %688  ;;  %v720_v50 = vsub.f32 %v2986_v30, %v2994_v40  ;;  %1282 = vst.msk [vmem:[#allocation2 + $0x70] sm:$0xff] %vm962_vm1, %v2994_v40  ;;  %2033 = vpow2.f32 %v744_v32  ;;  %v716_v57 = vsub.f32 %v2965_v8, %v2972_v14 }
 0x295   : > { %v3006_v54 = vmax.f32 %v2991_v39, %v689_v42  ;;  %v748_v33 = vmul.f32 1.442695, %v719_v37  ;;  %2035 = vpow2.f32 %v730_v9  ;;  %v3034_v13 = vpop.eup %2025 }
 0x296   : > { %v3036_v17 = vpop.eup %2027  ;;  %v742_v43 = vmul.f32 1.442695, %v716_v57 }
 0x297   : > { %v721_v55 = vsub.f32 %v2991_v39, %v3006_v54  ;;  %1283 = vst.msk [vmem:[#allocation2 + $0x78] sm:$0xff] %vm962_vm1, %v3006_v54  ;;  %831 = vperm.xlu0 %2017, %v3006_v54   ;;  %2037 = vpow2.f32 %v748_v33 }
 0x298   : > { %796 = vperm.xlu1 %2018, %v2962_v5   ;;  %2039 = vpow2.f32 %v734_v44  ;;  %v718_v5 = vsub.f32 %v2975_v15, %v2983_v27 }
 0x299   : > { %v3042_v16 = vpop.eup %2029  ;;  %2041 = vpow2.f32 %v738_v46 }
 0x29a   : > { %v3044_v19 = vpop.eup %2031  ;;  %2043 = vpow2.f32 %v742_v43  ;;  %v746_v8 = vmul.f32 1.442695, %v718_v5 }
 0x29b   : > { %997 = vperm.xlu0 %2017, %v3016_v31  }
 0x29c   : > { %806 = vperm.xlu1 %2018, %v2972_v14   ;;  %2045 = vpow2.f32 %v746_v8 }
 0x29e   : > { %v3050_v23 = vpop.eup %2033 }
 0x29f   : > { %1012 = vperm.xlu0 %2017, %v3022_v4   ;;  %v3052_v24 = vpop.eup %2035 }
 0x2a0   : > { %816 = vperm.xlu1 %2018, %v2983_v27  }
 0x2a1   : > { %v3056_v14 = vpop.eup %2037 }
 0x2a2   : > { %v3058_v25 = vpop.eup %2039 }
 0x2a3   : > { %1022 = vperm.xlu0 %2017, %v3028_v11   ;;  %v3062_v15 = vpop.eup %2041 }
 0x2a4   : > { %826 = vperm.xlu1 %2018, %v2994_v40   ;;  %v3065_v27 = vpop.eup %2043 }
 0x2a6   : > { %v3068_v34 = vpop.eup %2045 }
 0x2a7   : > { %1032 = vperm.xlu0 %2017, %v3034_v13  }
 0x2a8   : > { %1002 = vperm.xlu1 %2018, %v3036_v17  }
 0x2ab   : > { %1042 = vperm.xlu0 %2017, %v3042_v16  }
 0x2ac   : > { %1007 = vperm.xlu1 %2018, %v3044_v19  }
 0x2af   : > { %1052 = vperm.xlu0 %2017, %v3050_v23  }
 0x2b0   : > { %1017 = vperm.xlu1 %2018, %v3052_v24  }
 0x2b3   : > { %1062 = vperm.xlu0 %2017, %v3056_v14  }
 0x2b4   : > { %1027 = vperm.xlu1 %2018, %v3058_v25  }
 0x2b8   : > { %1037 = vperm.xlu1 %2018, %v3062_v15  }
 0x2bc   : > { %1047 = vperm.xlu1 %2018, %v3065_v27  }
 0x2c0   : > { %1057 = vperm.xlu1 %2018, %v3068_v34  }
 0x2f7   : > { %v757_v21 = vpop.permute.xlu0 %756 }
 0x2f8   : > { %v834_v26 = vsub.f32 %v2805_v62, %v757_v21 }
 0x2fa   : > { %v850_v35 = vmul.f32 1.442695, %v834_v26 }
 0x2fb   : > { %v762_v36 = vpop.permute.xlu1 %761 }
 0x2fc   : > { %2047 = vpow2.f32 %v850_v35  ;;  %v835_v47 = vsub.f32 %v2818_v7, %v762_v36 }
 0x2fe   : > { %v852_v48 = vmul.f32 1.442695, %v835_v47 }
 0x2ff   : > { %v772_v42 = vpop.permute.xlu1 %771 }
 0x300   : > { %2049 = vpow2.f32 %v852_v48  ;;  %v837_v51 = vsub.f32 %v2815_v6, %v772_v42 }
 0x302   : > { %v856_v56 = vmul.f32 1.442695, %v837_v51 }
 0x303   : > { %v767_v58 = vpop.permute.xlu1 %766 }
 0x304   : > { %2051 = vpow2.f32 %v856_v56  ;;  %v836_v61 = vsub.f32 %v2822_v10, %v767_v58 }
 0x306   : > { %v2048_v22 = vpop.eup %2047  ;;  %v854_v63 = vmul.f32 1.442695, %v836_v61 }
 0x307   : > { %v782_v45 = vpop.permute.xlu1 %781  ;;  %914 = vadd.xlane.f32.xlu1 %v2048_v22  ;;  %1793 = vmatprep.mubr.f32.mxu1 %v2048_v22 }
 0x308   : > { %2053 = vpow2.f32 %v854_v63  ;;  %v839_v62 = vsub.f32 %v2833_v20, %v782_v45 }
 0x30a   : > { %v2050_v2 = vpop.eup %2049  ;;  %v860_v7 = vmul.f32 1.442695, %v839_v62  ;;  %v802_v3 = vpop.permute.xlu0 %801 }
 0x30b   : > { %v777_v32 = vpop.permute.xlu1 %776  ;;  %916 = vadd.xlane.f32.xlu0 %v2050_v2  ;;  %1794 = vmatmul.mubr.f32.vlgmr.msra.gmra.mrb[0].mxu1 %v2050_v2  ;;  %v843_v44 = vsub.f32 %v2857_v41, %v802_v3 }
 0x30c   : > { %2055 = vpow2.f32 %v860_v7  ;;  %v838_v6 = vsub.f32 %v2830_v18, %v777_v32 }
 0x30d   : > { %v868_v18 = vmul.f32 1.442695, %v843_v44 }
 0x30e   : > { %v2052_v37 = vpop.eup %2051  ;;  %v858_v9 = vmul.f32 1.442695, %v838_v6  ;;  %v812_v10 = vpop.permute.xlu0 %811 }
 0x30f   : > { %v792_v49 = vpop.permute.xlu1 %791  ;;  %920 = vadd.xlane.f32.xlu1 %v2052_v37  ;;  %v845_v5 = vsub.f32 %v2868_v53, %v812_v10 }
 0x310   : > { %2057 = vpow2.f32 %v858_v9  ;;  %v841_v33 = vsub.f32 %v2845_v29, %v792_v49  ;;  %v752_v9 = vmul.f32 1.442695, %v721_v55 }
 0x311   : > { %v872_v41 = vmul.f32 1.442695, %v845_v5 }
 0x312   : > { %v2054_v20 = vpop.eup %2053  ;;  %v864_v12 = vmul.f32 1.442695, %v841_v33  ;;  %v822_v57 = vpop.permute.xlu0 %821 }
 0x313   : > { %v787_v46 = vpop.permute.xlu1 %786  ;;  %918 = vadd.xlane.f32.xlu0 %v2054_v20  ;;  %1796 = vmatprep.mubr.f32.mxu1 %v2054_v20  ;;  %v847_v35 = vsub.f32 %v2878_v60, %v822_v57 }
 0x314   : > { %2059 = vpow2.f32 %v864_v12  ;;  %v840_v43 = vsub.f32 %v2842_v28, %v787_v46  ;;  %1797 = vmatmul.mubr.f32.gmra.mrb[2].mxu1 %v2052_v37  ;;  %v750_v37 = vmul.f32 1.442695, %v720_v50 }
 0x315   : > { %v876_v53 = vmul.f32 1.442695, %v847_v35 }
 0x316   : > { %v2056_v8 = vpop.eup %2055  ;;  %v862_v21 = vmul.f32 1.442695, %v840_v43  ;;  %v832_v47 = vpop.permute.xlu0 %831 }
 0x317   : > { %v797_v26 = vpop.permute.xlu1 %796  ;;  %924 = vadd.xlane.f32.xlu1 %v2056_v8  ;;  %v849_v51 = vsub.f32 %v2886_v1, %v832_v47 }
 0x318   : > { %2061 = vpow2.f32 %v862_v21  ;;  %v842_v29 = vsub.f32 %v2854_v38, %v797_v26  ;;  %v883_v26 = vld [vmem:[#allocation3 + $0x8] sm:$0xff] }
 0x319   : > { %2063 = vpow2.f32 %v868_v18  ;;  %v880_v61 = vmul.f32 1.442695, %v849_v51  ;;  %v882_v18 = vld [vmem:[#allocation3] sm:$0xff] }
 0x31a   : > { %v2058_v36 = vpop.eup %2057  ;;  %v866_v48 = vmul.f32 1.442695, %v842_v29  ;;  %v3101_v30 = vpop.permute.xlu0 %997  ;;  %v898_v5 = vmul.f32 %v3016_v31, %v882_v18  ;;  %v892_v18 = vld [vmem:[#allocation3 + $0x50] sm:$0xff] }
 0x31b   : > { %v807_v42 = vpop.permute.xlu1 %806  ;;  %922 = vadd.xlane.f32.xlu0 %v2058_v36  ;;  %1799 = vmatprep.mubr.f32.mxu1 %v2058_v36  ;;  %v885_v36 = vld [vmem:[#allocation3 + $0x18] sm:$0xff] }
 0x31c   : > { %2065 = vpow2.f32 %v866_v48  ;;  %v844_v28 = vsub.f32 %v2866_v52, %v807_v42  ;;  %1800 = vmatmul.mubr.f32.gmra.mrb[4].mxu1 %v2056_v8  ;;  %v901_v48 = vmul.f32 %v3022_v4, %v885_v36 }
 0x31d   : > { %2067 = vpow2.f32 %v872_v41  ;;  %v899_v41 = vmul.f32 %v3036_v17, %v883_v26  ;;  %v908_v26 = vmul.f32 %v3065_v27, %v892_v18  ;;  %v896_v27 = vld [vmem:[#allocation3 + $0x70] sm:$0xff] }
 0x31e   : > { %v2060_v56 = vpop.eup %2059  ;;  %v870_v38 = vmul.f32 1.442695, %v844_v28  ;;  %v3105_v50 = vpop.permute.xlu0 %1012  ;;  %v884_v28 = vld [vmem:[#allocation3 + $0x10] sm:$0xff] }
 0x31f   : > { %v817_v58 = vpop.permute.xlu1 %816  ;;  %928 = vadd.xlane.f32.xlu1 %v2060_v56  ;;  %v900_v31 = vmul.f32 %v3044_v19, %v884_v28 }
 0x320   : > { %2069 = vpow2.f32 %v870_v38  ;;  %v846_v60 = vsub.f32 %v2876_v59, %v817_v58 }
 0x321   : > { %2071 = vpow2.f32 %v876_v53 }
 0x322   : > { %v2062_v22 = vpop.eup %2061  ;;  %v874_v63 = vmul.f32 1.442695, %v846_v60  ;;  %v3109_v39 = vpop.permute.xlu0 %1022  ;;  %v886_v60 = vld [vmem:[#allocation3 + $0x20] sm:$0xff] }
 0x323   : > { %v2064_v45 = vpop.eup %2063  ;;  %926 = vadd.xlane.f32.xlu0 %v2062_v22  ;;  %v827_v62 = vpop.permute.xlu1 %826  ;;  %1802 = vmatprep.mubr.f32.mxu1 %v2062_v22  ;;  %v902_v4 = vmul.f32 %v3052_v24, %v886_v60 }
 0x324   : > { %2073 = vpow2.f32 %v874_v63  ;;  %v848_v52 = vsub.f32 %v2884_v0, %v827_v62  ;;  %932 = vadd.xlane.f32.xlu1 %v2064_v45  ;;  %1803 = vmatmul.mubr.f32.gmra.mrb[6].mxu1 %v2060_v56  ;;  %v887_v56 = vld [vmem:[#allocation3 + $0x28] sm:$0xff]  ;;  %v889_v63 = vld [vmem:[#allocation3 + $0x38] sm:$0xff] }
 0x325   : > { %2075 = vpow2.f32 %v880_v61  ;;  %v903_v17 = vmul.f32 %v3028_v11, %v887_v56  ;;  %v905_v19 = vmul.f32 %v3034_v13, %v889_v63  ;;  %v982_v63 = vld [vmem:[#allocation4 + $0x18] sm:$0xff] }
 0x326   : > { %v2066_v1 = vpop.eup %2065  ;;  %v878_v2 = vmul.f32 1.442695, %v848_v52  ;;  %v3113_v55 = vpop.permute.xlu0 %1032  ;;  %v888_v52 = vld [vmem:[#allocation3 + $0x30] sm:$0xff] }
 0x327   : > { %v2068_v7 = vpop.eup %2067  ;;  %930 = vadd.xlane.f32.xlu0 %v2066_v1  ;;  %1805 = vmatprep.mubr.f32.mxu1 %v2066_v1  ;;  %v3099_v33 = vpop.permute.xlu1 %1002  ;;  %v904_v11 = vmul.f32 %v3058_v25, %v888_v52 }
 0x328   : > { %2077 = vpow2.f32 %v878_v2  ;;  %936 = vadd.xlane.f32.xlu1 %v2068_v7  ;;  %1806 = vmatmul.mubr.f32.gmra.mrb[8].mxu1 %v2064_v45  ;;  %v891_v2 = vld [vmem:[#allocation3 + $0x48] sm:$0xff] }
 0x329   : > { %2079 = vpow2.f32 %v750_v37 }
 0x32a   : > { %v2070_v59 = vpop.eup %2069  ;;  %2081 = vpow2.f32 %v752_v9  ;;  %v3117_v12 = vpop.permute.xlu0 %1042 }
 0x32b   : > { %v2072_v3 = vpop.eup %2071  ;;  %934 = vadd.xlane.f32.xlu0 %v2070_v59  ;;  %1808 = vmatprep.mubr.f32.mxu1 %v2070_v59  ;;  %v3103_v40 = vpop.permute.xlu1 %1007 }
 0x32c   : > { %940 = vadd.xlane.f32.xlu1 %v2072_v3  ;;  %1809 = vmatmul.mubr.f32.gmra.mrb[10].mxu1 %v2068_v7  ;;  %v907_v7 = vmul.f32 %v3042_v16, %v891_v2 }
 0x32e   : > { %v2074_v32 = vpop.eup %2073  ;;  %v3121_v57 = vpop.permute.xlu0 %1052 }
 0x32f   : > { %v2076_v6 = vpop.eup %2075  ;;  %938 = vadd.xlane.f32.xlu0 %v2074_v32  ;;  %1811 = vmatprep.mubr.f32.mxu1 %v2074_v32  ;;  %v3107_v44 = vpop.permute.xlu1 %1017 }
 0x330   : > { %944 = vadd.xlane.f32.xlu1 %v2076_v6  ;;  %1812 = vmatmul.mubr.f32.gmra.mrb[12].mxu1 %v2072_v3  ;;  %v890_v3 = vld [vmem:[#allocation3 + $0x40] sm:$0xff] }
 0x331   : > { %v906_v13 = vmul.f32 %v3062_v15, %v890_v3  ;;  %v894_v15 = vld [vmem:[#allocation3 + $0x60] sm:$0xff] }
 0x332   : > { %v2078_v0 = vpop.eup %2077  ;;  %v3126_v8 = vpop.permute.xlu0 %1062 }
 0x333   : > { %942 = vadd.xlane.f32.xlu0 %v2078_v0  ;;  %1814 = vmatprep.mubr.f32.mxu1 %v2078_v0  ;;  %v3093_v10 = vpop.eup %2079  ;;  %v3111_v54 = vpop.permute.xlu1 %1027 }
 0x334   : > { %1815 = vmatmul.mubr.f32.gmra.mrb[14].mxu1 %v2076_v6  ;;  %v3096_v49 = vpop.eup %2081  ;;  %v893_v6 = vld [vmem:[#allocation3 + $0x58] sm:$0xff] }
 0x335   : > { %v909_v37 = vmul.f32 %v3050_v23, %v893_v6 }
 0x337   : > { %v3115_v20 = vpop.permute.xlu1 %1037 }
 0x33b   : > { %v3119_v46 = vpop.permute.xlu1 %1047 }
 0x33f   : > { %v3123_v43 = vpop.permute.xlu1 %1057 }
 0x341   : > { %1067 = vperm.xlu1 %2018, %v3093_v10  }
 0x349   : > { %1072 = vperm.xlu0 %2017, %v3096_v49  }
 0x394   : > { %v915_v21 = vpop.xlane.xlu1 %914 }
 0x395   : > { %v946_v29 = vadd.f32 %v915_v21, %v898_v5  ;;  %v895_v21 = vld [vmem:[#allocation3 + $0x68] sm:$0xff] }
 0x397   : > { %963 = vst.msk [vmem:[#allocation3] sm:$0xff] %vm962_vm1, %v946_v29  ;;  %v911_v29 = vmul.f32 %v3056_v14, %v895_v21  ;;  %v912_v14 = vmul.f32 %v3093_v10, %v896_v27  ;;  %v981_v10 = vld [vmem:[#allocation4 + $0x10] sm:$0xff] }
 0x398   : > { %v917_v35 = vpop.xlane.xlu0 %916 }
 0x399   : > { %v947_v47 = vadd.f32 %v917_v35, %v899_v41 }
 0x39b   : > { %964 = vst.msk [vmem:[#allocation3 + $0x8] sm:$0xff] %vm962_vm1, %v947_v47  ;;  %v897_v47 = vld [vmem:[#allocation3 + $0x78] sm:$0xff] }
 0x39c   : > { %v921_v42 = vpop.xlane.xlu1 %920 }
 0x39d   : > { %v949_v53 = vadd.f32 %v921_v42, %v901_v48  ;;  %v910_v48 = vmul.f32 %v3068_v34, %v894_v15  ;;  %v913_v42 = vmul.f32 %v3096_v49, %v897_v47  ;;  %v980_v34 = vld [vmem:[#allocation4 + $0x8] sm:$0xff]  ;;  %v991_v47 = vld [vmem:[#allocation4 + $0x60] sm:$0xff] }
 0x39f   : > { %966 = vst.msk [vmem:[#allocation3 + $0x18] sm:$0xff] %vm962_vm1, %v949_v53 }
 0x3a0   : > { %v919_v51 = vpop.xlane.xlu0 %918 }
 0x3a1   : > { %v948_v38 = vadd.f32 %v919_v51, %v900_v31 }
 0x3a3   : > { %965 = vst.msk [vmem:[#allocation3 + $0x10] sm:$0xff] %vm962_vm1, %v948_v38 }
 0x3a4   : > { %v925_v58 = vpop.xlane.xlu1 %924 }
 0x3a5   : > { %v951_v61 = vadd.f32 %v925_v58, %v903_v17  ;;  %v979_v17 = vld [vmem:[#allocation4] sm:$0xff]  ;;  %v1076_v58 = vmul.f32 %v3099_v33, %v980_v34  ;;  %v984_v33 = vld [vmem:[#allocation4 + $0x28] sm:$0xff] }
 0x3a6   : > { %v1075_v49 = vmul.f32 %v3101_v30, %v979_v17  ;;  %v983_v30 = vld [vmem:[#allocation4 + $0x20] sm:$0xff] }
 0x3a7   : > { %968 = vst.msk [vmem:[#allocation3 + $0x28] sm:$0xff] %vm962_vm1, %v951_v61 }
 0x3a8   : > { %v923_v22 = vpop.xlane.xlu0 %922 }
 0x3a9   : > { %v950_v45 = vadd.f32 %v923_v22, %v902_v4 }
 0x3ab   : > { %967 = vst.msk [vmem:[#allocation3 + $0x20] sm:$0xff] %vm962_vm1, %v950_v45  ;;  %v1078_v45 = vmul.f32 %v3105_v50, %v982_v63  ;;  %v986_v50 = vld [vmem:[#allocation4 + $0x38] sm:$0xff] }
 0x3ac   : > { %v929_v62 = vpop.xlane.xlu1 %928  ;;  %v1082_v6 = vmul.f32 %v3113_v55, %v986_v50 }
 0x3ad   : > { %v953_v1 = vadd.f32 %v929_v62, %v905_v19  ;;  %v1077_v19 = vmul.f32 %v3103_v40, %v981_v10  ;;  %v985_v40 = vld [vmem:[#allocation4 + $0x30] sm:$0xff] }
 0x3af   : > { %970 = vst.msk [vmem:[#allocation3 + $0x38] sm:$0xff] %vm962_vm1, %v953_v1 }
 0x3b0   : > { %v927_v59 = vpop.xlane.xlu0 %926 }
 0x3b1   : > { %v933_v24 = vpop.xlane.xlu1 %932  ;;  %v952_v32 = vadd.f32 %v927_v59, %v904_v11  ;;  %v1080_v11 = vmul.f32 %v3109_v39, %v984_v33 }
 0x3b2   : > { %v955_v0 = vadd.f32 %v933_v24, %v907_v7  ;;  %v1079_v7 = vmul.f32 %v3107_v44, %v983_v30 }
 0x3b3   : > { %969 = vst.msk [vmem:[#allocation3 + $0x30] sm:$0xff] %vm962_vm1, %v952_v32 }
 0x3b4   : > { %972 = vst.msk [vmem:[#allocation3 + $0x48] sm:$0xff] %vm962_vm1, %v955_v0  ;;  %v931_v9 = vpop.xlane.xlu0 %930  ;;  %v988_v0 = vld [vmem:[#allocation4 + $0x48] sm:$0xff] }
 0x3b5   : > { %v937_v5 = vpop.xlane.xlu1 %936  ;;  %v954_v25 = vadd.f32 %v931_v9, %v906_v13  ;;  %v1081_v13 = vmul.f32 %v3111_v54, %v985_v40  ;;  %v987_v9 = vld [vmem:[#allocation4 + $0x40] sm:$0xff]  ;;  %v1084_v44 = vmul.f32 %v3117_v12, %v988_v0  ;;  %v992_v54 = vld [vmem:[#allocation4 + $0x68] sm:$0xff] }
 0x3b6   : > { %v957_v16 = vadd.f32 %v937_v5, %v909_v37  ;;  %v1083_v21 = vmul.f32 %v3115_v20, %v987_v9  ;;  %v1088_v20 = vmul.f32 %v3126_v8, %v992_v54 }
 0x3b7   : > { %971 = vst.msk [vmem:[#allocation3 + $0x40] sm:$0xff] %vm962_vm1, %v954_v25  ;;  %v990_v25 = vld [vmem:[#allocation4 + $0x58] sm:$0xff] }
 0x3b8   : > { %974 = vst.msk [vmem:[#allocation3 + $0x58] sm:$0xff] %vm962_vm1, %v957_v16  ;;  %v935_v41 = vpop.xlane.xlu0 %934  ;;  %v1086_v15 = vmul.f32 %v3121_v57, %v990_v25  ;;  %v993_v57 = vld [vmem:[#allocation4 + $0x70] sm:$0xff] }
 0x3b9   : > { %v941_v35 = vpop.xlane.xlu1 %940  ;;  %v956_v36 = vadd.f32 %v935_v41, %v908_v26  ;;  %v989_v26 = vld [vmem:[#allocation4 + $0x50] sm:$0xff] }
 0x3ba   : > { %v959_v23 = vadd.f32 %v941_v35, %v911_v29  ;;  %v1085_v35 = vmul.f32 %v3119_v46, %v989_v26 }
 0x3bb   : > { %973 = vst.msk [vmem:[#allocation3 + $0x50] sm:$0xff] %vm962_vm1, %v956_v36 }
 0x3bc   : > { %976 = vst.msk [vmem:[#allocation3 + $0x68] sm:$0xff] %vm962_vm1, %v959_v23  ;;  %v939_v28 = vpop.xlane.xlu0 %938 }
 0x3bd   : > { %v945_v53 = vpop.xlane.xlu1 %944  ;;  %v958_v31 = vadd.f32 %v939_v28, %v910_v48  ;;  %v994_v28 = vld [vmem:[#allocation4 + $0x78] sm:$0xff] }
 0x3be   : > { %v961_v51 = vadd.f32 %v945_v53, %v913_v42  ;;  %v1087_v42 = vmul.f32 %v3123_v43, %v991_v47 }
 0x3bf   : > { %975 = vst.msk [vmem:[#allocation3 + $0x60] sm:$0xff] %vm962_vm1, %v958_v31 }
 0x3c0   : > { %978 = vst.msk [vmem:[#allocation3 + $0x78] sm:$0xff] %vm962_vm1, %v961_v51  ;;  %v943_v56 = vpop.xlane.xlu0 %942 }
 0x3c1   : > { %v960_v38 = vadd.f32 %v943_v56, %v912_v14  ;;  %v1068_v31 = vpop.permute.xlu1 %1067 }
 0x3c3   : > { %977 = vst.msk [vmem:[#allocation3 + $0x70] sm:$0xff] %vm962_vm1, %v960_v38  ;;  %v1089_v38 = vmul.f32 %v1068_v31, %v993_v57 }
 0x3c8   : > { %v1073_v27 = vpop.permute.xlu0 %1072 }
 0x3c9   : > { %v1090_v56 = vmul.f32 %v1073_v27, %v994_v28 }
 0x3de   : > { %v1795_v60 = vpop.f32.mrb[0].mxu1 }
 0x3df   : > { %v1237_v61 = vadd.f32 %v1795_v60, %v1076_v58  ;;  %v1157_v4 = vpop.f32.mrb[1].mxu1 }
 0x3e0   : > { %v1236_v22 = vadd.f32 %v1157_v4, %v1075_v49 }
 0x3e1   : > { %1253 = vst [vmem:[#allocation4 + $0x8] sm:$0xff] %v1237_v61 }
 0x3e2   : > { %1252 = vst [vmem:[#allocation4] sm:$0xff] %v1236_v22 }
 0x3e7   : > { %v1798_v62 = vpop.f32.mrb[2].mxu1 }
 0x3e8   : > { %v1239_v52 = vadd.f32 %v1798_v62, %v1078_v45  ;;  %v1167_v1 = vpop.f32.mrb[3].mxu1 }
 0x3e9   : > { %v1238_v2 = vadd.f32 %v1167_v1, %v1077_v19 }
 0x3ea   : > { %1255 = vst [vmem:[#allocation4 + $0x18] sm:$0xff] %v1239_v52 }
 0x3eb   : > { %1254 = vst [vmem:[#allocation4 + $0x10] sm:$0xff] %v1238_v2 }
 0x3ef   : > { %v1801_v59 = vpop.f32.mrb[4].mxu1 }
 0x3f0   : > { %v1241_v3 = vadd.f32 %v1801_v59, %v1080_v11  ;;  %v1177_v24 = vpop.f32.mrb[5].mxu1 }
 0x3f1   : > { %v1240_v32 = vadd.f32 %v1177_v24, %v1079_v7 }
 0x3f2   : > { %1257 = vst [vmem:[#allocation4 + $0x28] sm:$0xff] %v1241_v3 }
 0x3f3   : > { %1256 = vst [vmem:[#allocation4 + $0x20] sm:$0xff] %v1240_v32 }
 0x3f7   : > { %v1804_v37 = vpop.f32.mrb[6].mxu1 }
 0x3f8   : > { %v1243_v18 = vadd.f32 %v1804_v37, %v1082_v6  ;;  %v1187_v5 = vpop.f32.mrb[7].mxu1 }
 0x3f9   : > { %v1242_v39 = vadd.f32 %v1187_v5, %v1081_v13 }
 0x3fa   : > { %1259 = vst [vmem:[#allocation4 + $0x38] sm:$0xff] %v1243_v18 }
 0x3fb   : > { %1258 = vst [vmem:[#allocation4 + $0x30] sm:$0xff] %v1242_v39  ;;  %v1807_v16 = vpop.f32.mrb[8].mxu1 }
 0x3fc   : > { %v1245_v29 = vadd.f32 %v1807_v16, %v1084_v44  ;;  %v1197_v41 = vpop.f32.mrb[9].mxu1 }
 0x3fd   : > { %v1244_v55 = vadd.f32 %v1197_v41, %v1083_v21 }
 0x3fe   : > { %1261 = vst [vmem:[#allocation4 + $0x48] sm:$0xff] %v1245_v29 }
 0x3ff   : > { %1260 = vst [vmem:[#allocation4 + $0x40] sm:$0xff] %v1244_v55  ;;  %v1810_v36 = vpop.f32.mrb[10].mxu1 }
 0x400   : > { %v1247_v12 = vadd.f32 %v1810_v36, %v1086_v15  ;;  %v1207_v23 = vpop.f32.mrb[11].mxu1 }
 0x401   : > { %v1246_v48 = vadd.f32 %v1207_v23, %v1085_v35 }
 0x402   : > { %1263 = vst [vmem:[#allocation4 + $0x58] sm:$0xff] %v1247_v12 }
 0x403   : > { %1262 = vst [vmem:[#allocation4 + $0x50] sm:$0xff] %v1246_v48  ;;  %v1813_v53 = vpop.f32.mrb[12].mxu1 }
 0x404   : > { %v1249_v51 = vadd.f32 %v1813_v53, %v1088_v20  ;;  %v1217_v14 = vpop.f32.mrb[13].mxu1 }
 0x405   : > { %v1248_v46 = vadd.f32 %v1217_v14, %v1087_v42 }
 0x406   : > { %1265 = vst [vmem:[#allocation4 + $0x68] sm:$0xff] %v1249_v51 }
 0x407   : > { %1264 = vst [vmem:[#allocation4 + $0x60] sm:$0xff] %v1248_v46  ;;  %v1816_v34 = vpop.f32.mrb[14].mxu1 }
 0x408   : > { %v1251_v17 = vadd.f32 %v1816_v34, %v1090_v56  ;;  %v1227_v58 = vpop.f32.mrb[15].mxu1 }
 0x409   : > { %v1250_v8 = vadd.f32 %v1227_v58, %v1089_v38 }
 0x40a   : > { %1267 = vst [vmem:[#allocation4 + $0x78] sm:$0xff] %v1251_v17 }
 0x40b   : > { %1266 = vst [vmem:[#allocation4 + $0x70] sm:$0xff] %v1250_v8 }
 0x40c PF: > { %s3359_s4 = sld [smem:[#allocation18_spill]] }
 0x412   : > { %p1634_p0 = scmp.ne.s32.totalorder %s3359_s4, 1 }
 0x413   : > { %v1290_v43 = vld [vmem:[#allocation3 + $0x10] sm:$0xff] (!%p1634_p0)  ;;  %v1288_v49 = vld [vmem:[#allocation3] sm:$0xff] (!%p1634_p0)  ;;  %v1291_v60 = vld [vmem:[#allocation3 + $0x18] sm:$0xff] (!%p1634_p0)  ;;  %v2359_v61 = vmov (!%p1634_p0), 0  }
 0x414   : > { %1287 = sbr.rel (%p1634_p0) target bundleno = 1215 (0x4bf), region = 56  ;;  %2084 = vset.pattern.permute.xlu1 (!%p1634_p0), %v2359_v61  ;;  %2083 = vset.pattern.permute.xlu0 (!%p1634_p0), %v2359_v61  ;;  %2085 = vrcp.f32 (!%p1634_p0), %v1290_v43  ;;  %v1289_v4 = vld [vmem:[#allocation3 + $0x8] sm:$0xff] (!%p1634_p0)  ;;  %v1292_v63 = vld [vmem:[#allocation3 + $0x20] sm:$0xff] (!%p1634_p0)  ;;  %v1295_v10 = vld [vmem:[#allocation3 + $0x38] sm:$0xff] (!%p1634_p0) }
 0x415   : > { %2087 = vrcp.f32 (!%p1634_p0), %v1288_v49  ;;  %v1293_v22 = vld [vmem:[#allocation3 + $0x28] sm:$0xff] (!%p1634_p0)  ;;  %v1294_v45 = vld [vmem:[#allocation3 + $0x30] sm:$0xff] (!%p1634_p0)  ;;  %v1296_v2 = vld [vmem:[#allocation3 + $0x40] sm:$0xff] (!%p1634_p0) }
 0x416   : > { %2089 = vrcp.f32 (!%p1634_p0), %v1291_v60  ;;  %v1297_v52 = vld [vmem:[#allocation3 + $0x48] sm:$0xff] (!%p1634_p0)  ;;  %v1299_v30 = vld [vmem:[#allocation3 + $0x58] sm:$0xff] (!%p1634_p0)  ;;  %v1298_v7 = vld [vmem:[#allocation3 + $0x50] sm:$0xff] (!%p1634_p0) }
 0x417   : > { %2091 = vrcp.f32 (!%p1634_p0), %v1289_v4  ;;  %v1301_v3 = vld [vmem:[#allocation3 + $0x68] sm:$0xff] (!%p1634_p0)  ;;  %v1300_v32 = vld [vmem:[#allocation3 + $0x60] sm:$0xff] (!%p1634_p0)  ;;  %v1303_v40 = vld [vmem:[#allocation3 + $0x78] sm:$0xff] (!%p1634_p0) }
 0x418   : > { %2093 = vrcp.f32 (!%p1634_p0), %v1293_v22  ;;  %v1302_v0 = vld [vmem:[#allocation3 + $0x70] sm:$0xff] (!%p1634_p0)  ;;  %v1320_v21 = vld [vmem:[#allocation4] sm:$0xff] (!%p1634_p0)  ;;  %v1323_v55 = vld [vmem:[#allocation4 + $0x18] sm:$0xff] (!%p1634_p0) }
 0x419   : > { %2095 = vrcp.f32 (!%p1634_p0), %v1292_v63  ;;  %v1322_v25 = vld [vmem:[#allocation4 + $0x10] sm:$0xff] (!%p1634_p0)  ;;  %v1321_v15 = vld [vmem:[#allocation4 + $0x8] sm:$0xff] (!%p1634_p0)  ;;  %v1324_v23 = vld [vmem:[#allocation4 + $0x20] sm:$0xff] (!%p1634_p0) }
 0x41a   : > { %2097 = vrcp.f32 (!%p1634_p0), %v1295_v10  ;;  %v1325_v12 = vld [vmem:[#allocation4 + $0x28] sm:$0xff] (!%p1634_p0)  ;;  %v1327_v27 = vld [vmem:[#allocation4 + $0x38] sm:$0xff] (!%p1634_p0)  ;;  %v1326_v53 = vld [vmem:[#allocation4 + $0x30] sm:$0xff] (!%p1634_p0) }
 0x41b   : > { %2099 = vrcp.f32 %v1294_v45  ;;  %v1329_v46 = vld [vmem:[#allocation4 + $0x48] sm:$0xff]  ;;  %v1328_v56 = vld [vmem:[#allocation4 + $0x40] sm:$0xff]  ;;  %v1331_v8 = vld [vmem:[#allocation4 + $0x58] sm:$0xff] }
 0x41c   : > { %2101 = vrcp.f32 %v1297_v52  ;;  %v1330_v43 = vld [vmem:[#allocation4 + $0x50] sm:$0xff]  ;;  %v1333_v22 = vld [vmem:[#allocation4 + $0x68] sm:$0xff]  ;;  %v1332_v63 = vld [vmem:[#allocation4 + $0x60] sm:$0xff] }
 0x41d   : > { %2103 = vrcp.f32 %v1296_v2  ;;  %v1335_v52 = vld [vmem:[#allocation4 + $0x78] sm:$0xff] }
 0x41e   : > { %v2086_v19 = vpop.eup %2085  ;;  %2105 = vrcp.f32 %v1299_v30 }
 0x41f   : > { %v2088_v62 = vpop.eup %2087  ;;  %1348 = vperm.xlu1 %2084, %v2086_v19   ;;  %2107 = vrcp.f32 %v1298_v7 }
 0x420   : > { %v2090_v1 = vpop.eup %2089  ;;  %1338 = vperm.xlu0 %2083, %v2088_v62   ;;  %2109 = vrcp.f32 %v1301_v3 }
 0x421   : > { %v2092_v33 = vpop.eup %2091  ;;  %2111 = vrcp.f32 %v1300_v32 }
 0x422   : > { %v2094_v11 = vpop.eup %2093  ;;  %2113 = vrcp.f32 %v1303_v40 }
 0x423   : > { %1353 = vperm.xlu1 %2084, %v2090_v1   ;;  %v2096_v59 = vpop.eup %2095  ;;  %2115 = vrcp.f32 %v1302_v0  ;;  %v1334_v1 = vld [vmem:[#allocation4 + $0x70] sm:$0xff] }
 0x424   : > { %1343 = vperm.xlu0 %2083, %v2092_v33   ;;  %v2098_v24 = vpop.eup %2097 }
 0x425   : > { %v2100_v50 = vpop.eup %2099 }
 0x426   : > { %v2102_v6 = vpop.eup %2101 }
 0x427   : > { %1363 = vperm.xlu1 %2084, %v2094_v11   ;;  %v2104_v13 = vpop.eup %2103 }
 0x428   : > { %1358 = vperm.xlu0 %2083, %v2096_v59   ;;  %v2106_v37 = vpop.eup %2105 }
 0x429   : > { %v2108_v9 = vpop.eup %2107 }
 0x42a   : > { %v2110_v18 = vpop.eup %2109 }
 0x42b   : > { %1373 = vperm.xlu1 %2084, %v2098_v24   ;;  %v2112_v5 = vpop.eup %2111 }
 0x42c   : > { %1368 = vperm.xlu0 %2083, %v2100_v50   ;;  %v2114_v39 = vpop.eup %2113 }
 0x42d   : > { %v2116_v44 = vpop.eup %2115 }
 0x42f   : > { %1383 = vperm.xlu1 %2084, %v2102_v6  }
 0x430   : > { %1378 = vperm.xlu0 %2083, %v2104_v13  }
 0x433   : > { %1393 = vperm.xlu1 %2084, %v2106_v37  }
 0x434   : > { %1388 = vperm.xlu0 %2083, %v2108_v9  }
 0x437   : > { %1403 = vperm.xlu1 %2084, %v2110_v18  }
 0x438   : > { %1398 = vperm.xlu0 %2083, %v2112_v5  }
 0x43b   : > { %1413 = vperm.xlu1 %2084, %v2114_v39  }
 0x43c   : > { %1408 = vperm.xlu0 %2083, %v2116_v44  }
 0x49e   : > { %v1349_v16 = vpop.permute.xlu1 %1348 }
 0x49f   : > { %v1418_v26 = vmul.f32 %v1349_v16, %v1322_v25  ;;  %v1339_v29 = vpop.permute.xlu0 %1338 }
 0x4a0   : > { %v1416_v41 = vmul.f32 %v1339_v29, %v1320_v21 }
 0x4a1   : > { %1434 = vst [vmem:[%s2711_s22 + $0x10] sm:$0xff] %v1418_v26 }
 0x4a2   : > { %1432 = vst [vmem:[%s2711_s22] sm:$0xff] %v1416_v41  ;;  %v1354_v54 = vpop.permute.xlu1 %1353 }
 0x4a3   : > { %v1419_v35 = vmul.f32 %v1354_v54, %v1323_v55  ;;  %v1344_v36 = vpop.permute.xlu0 %1343 }
 0x4a4   : > { %v1417_v47 = vmul.f32 %v1344_v36, %v1321_v15 }
 0x4a5   : > { %1435 = vst [vmem:[%s2711_s22 + $0x18] sm:$0xff] %v1419_v35 }
 0x4a6   : > { %1433 = vst [vmem:[%s2711_s22 + $0x8] sm:$0xff] %v1417_v47  ;;  %v1364_v48 = vpop.permute.xlu1 %1363 }
 0x4a7   : > { %v1421_v20 = vmul.f32 %v1364_v48, %v1325_v12  ;;  %v1359_v42 = vpop.permute.xlu0 %1358 }
 0x4a8   : > { %v1420_v28 = vmul.f32 %v1359_v42, %v1324_v23 }
 0x4a9   : > { %1437 = vst [vmem:[%s2711_s22 + $0x28] sm:$0xff] %v1421_v20 }
 0x4aa   : > { %1436 = vst [vmem:[%s2711_s22 + $0x20] sm:$0xff] %v1420_v28  ;;  %v1374_v57 = vpop.permute.xlu1 %1373 }
 0x4ab   : > { %v1423_v31 = vmul.f32 %v1374_v57, %v1327_v27  ;;  %v1369_v51 = vpop.permute.xlu0 %1368 }
 0x4ac   : > { %v1422_v14 = vmul.f32 %v1369_v51, %v1326_v53 }
 0x4ad   : > { %1439 = vst [vmem:[%s2711_s22 + $0x38] sm:$0xff] %v1423_v31 }
 0x4ae   : > { %1438 = vst [vmem:[%s2711_s22 + $0x30] sm:$0xff] %v1422_v14  ;;  %v1384_v38 = vpop.permute.xlu1 %1383 }
 0x4af   : > { %v1425_v34 = vmul.f32 %v1384_v38, %v1329_v46  ;;  %v1379_v17 = vpop.permute.xlu0 %1378 }
 0x4b0   : > { %v1424_v58 = vmul.f32 %v1379_v17, %v1328_v56 }
 0x4b1   : > { %1441 = vst [vmem:[%s2711_s22 + $0x48] sm:$0xff] %v1425_v34 }
 0x4b2   : > { %1440 = vst [vmem:[%s2711_s22 + $0x40] sm:$0xff] %v1424_v58  ;;  %v1394_v49 = vpop.permute.xlu1 %1393 }
 0x4b3   : > { %v1427_v60 = vmul.f32 %v1394_v49, %v1331_v8  ;;  %v1389_v61 = vpop.permute.xlu0 %1388 }
 0x4b4   : > { %v1426_v4 = vmul.f32 %v1389_v61, %v1330_v43 }
 0x4b5   : > { %1443 = vst [vmem:[%s2711_s22 + $0x58] sm:$0xff] %v1427_v60 }
 0x4b6   : > { %1442 = vst [vmem:[%s2711_s22 + $0x50] sm:$0xff] %v1426_v4  ;;  %v1404_v10 = vpop.permute.xlu1 %1403 }
 0x4b7   : > { %v1429_v45 = vmul.f32 %v1404_v10, %v1333_v22  ;;  %v1399_v19 = vpop.permute.xlu0 %1398 }
 0x4b8   : > { %v1428_v62 = vmul.f32 %v1399_v19, %v1332_v63 }
 0x4b9   : > { %1445 = vst [vmem:[%s2711_s22 + $0x68] sm:$0xff] %v1429_v45 }
 0x4ba   : > { %1444 = vst [vmem:[%s2711_s22 + $0x60] sm:$0xff] %v1428_v62  ;;  %v1414_v2 = vpop.permute.xlu1 %1413 }
 0x4bb   : > { %v1431_v33 = vmul.f32 %v1414_v2, %v1335_v52  ;;  %v1409_v30 = vpop.permute.xlu0 %1408 }
 0x4bc   : > { %v1430_v11 = vmul.f32 %v1409_v30, %v1334_v1 }
 0x4bd   : > { %1447 = vst [vmem:[%s2711_s22 + $0x78] sm:$0xff] %v1431_v33 }
 0x4be   : > { %1446 = vst [vmem:[%s2711_s22 + $0x70] sm:$0xff] %v1430_v11 }
 0x4bf PF: > { %s3360_s7 = sld [smem:[#allocation19_spill]]  ;;  %s3361_s15 = sld [smem:[#allocation20_spill]] }
 0x4c0   : > { %s3362_s16 = sld [smem:[#allocation27_spill]]  ;;  %s1464_s8 = sshll.u32 %s2711_s22, 4  ;;  %s3193_s8 = int_to_ptr.vmem [resolvable:$true] %s1464_s8 }
 0x4c1   : > { %s3363_s19 = sld [smem:[#allocation31_spill]]  ;;  %s1449_s28 = scalar_lea.sflag [#allocation7], %s2691_s11 }
 0x4c2   : > { %s2207_s10 = scalar_lea.vmem %s3193_s8, 2048  ;;  %s2360_s20 = smov [#allocation11]  }
 0x4c3   : > { %p2208_p1 = scmp.ne.s32.totalorder %s3193_s8, %s2207_s10  ;;  %s2211_s22 = sshll.u32 %s2360_s20, 4  ;;  %s2212_s22 = int_to_ptr.vmem [resolvable:$false] %s2211_s22 }
 0x4c4   : > { %s2213_s27 = scalar_lea.vmem %s2212_s22, 4096  ;;  %p2214_p10 = scmp.lt.s32.totalorder %s3193_s8, %s2212_s22 }
 0x4c5   : > { %s1636_s18 = sshll.u32 %s3360_s7, 4  ;;  %s1637_s6 = sshll.u32 %s3361_s15, 5 }
 0x4c6   : > { %s1461_s30 = sadd.s32 %s1637_s6, %s1636_s18  ;;  %p3365_p7 = scmp.ne.s32.totalorder %s3362_s16, 0 }
 0x4c7   : > { %s1638_s1 = sshll.u32 %s1461_s30, 7  ;;  %s3364_s5 = smov %s3363_s19 }
 0x4c8   : > { %s3198_s3 = scalar_lea.hbm %s3363_s19, %s1638_s1  ;;  %p2209_p9 = pnand %p2208_p1, %p3365_p7 }
 0x4c9   : > { %p2215_p13 = scmp.lt.s32.totalorder %s2213_s27, %s2207_s10 }
 0x4ca   : > { %p2210_p5 = pneg %p2209_p9 }
 0x4cb   : > { %p2216_p2 = por %p2215_p13, %p2214_p10 }
 0x4cd   : > { %p2217_p8 = pnand %p2216_p2, %p2210_p5 }
 0x4cf   : > { %2220 = shalt.err (!%p2217_p8)
}
 0x4d0   : > { %s2221_s9 = scalar_lea.hbm %s3198_s3, 2048  ;;  %s2225_s15 = scalar_lea.hbm %s3364_s5, 16384 }
 0x4d1   : > { %p2222_p6 = scmp.ne.s32.totalorder %s3198_s3, %s2221_s9  ;;  %p2226_p3 = scmp.lt.u32.totalorder %s3198_s3, %s3364_s5 }
 0x4d2   : > { %p2227_p12 = scmp.lt.u32.totalorder %s2225_s15, %s2221_s9  ;;  %p2229_p1 = scmp.lt.u32.totalorder %s2221_s9, %s3198_s3 }
 0x4d3   : > { %p2223_p4 = pnand %p2222_p6, %p3365_p7 }
 0x4d4   : > { %p2228_p0 = por %p2227_p12, %p2226_p3 }
 0x4d5   : > { %p2224_p11 = pneg %p2223_p4 }
 0x4d6   : > { %p2230_p9 = por %p2229_p1, %p2228_p0 }
 0x4d8   : > { %p2231_p5 = pnand %p2230_p9, %p2224_p11 }
 0x4da   : > { %2234 = shalt.err (!%p2231_p5)
}
 0x4db   : > { %s2361_s30 = smov 128   ;;  %s2362_s1 = smov 8  }
 0x4dc   : > { %1887 = dma.vmem_to_hbm [thread:$0]  (%p3365_p7), %s3193_s8, 2048, %s3198_s3, %s1449_s28, %s2361_s30, %s2361_s30, %s2362_s1  }
 0x4dd PF: > { %s3366_s13 = sld [smem:[#allocation16_spill]]  ;;  %s3367_s12 = sld [smem:[#allocation29_spill]] }
 0x4de   : > { %p1904_p10 = scmp.ge.s32.totalorder %s2349_s24, 2 }
 0x4e3   : > { %s1479_s19 = sand.u32 1, %s3366_s13   ;;  %p3368_p13 = scmp.ne.s32.totalorder %s3367_s12, 0 }
 0x4e4   : > { %s1480_s10 = scalar_lea.sflag [#allocation7], %s1479_s19 }
 0x4e5   : > { %p1900_p2 = pnand %p1904_p10, %p3368_p13 }
 0x4e7   : > { %2296 = dma.done.wait (!%p1900_p2), %s1480_s10, 2048  }
 0x4e8   : > { %2298 = vsyncadd (!%p1900_p2), %s1480_s10, 4294965248  ;;  %s22_s24 = sadd.s32 1, %s2349_s24   ;;  %s3370_s12 = sld [smem:[#allocation15_spill]] }
 0x4e9   : > { %p3229_p8 = scmp.ge.s32.totalorder %s22_s24, 18   ;;  %s3371_s15 = sld [smem:[#allocation17_spill]] }
 0x4ea   : > { %s3372_s19 = sld [smem:[#allocation21_spill]]  ;;  %s3373_s22 = sld [smem:[#allocation26_spill]] }
 0x4eb   : > { %s3374_s11 = sld [smem:[#allocation28_spill]]  ;;  %s3376_s13 = smov %s2309_s14 }
 0x4ec   : > { %s3377_s14 = smov %s2611_s29  ;;  %s3378_s16 = smov %s2321_s17 }
 0x4ed   : > { %s3379_s17 = smov %s2606_s25  ;;  %s3380_s18 = smov %s2337_s21 }
 0x4ee   : > { %s3381_s20 = smov %s2345_s23  ;;  %s3382_s21 = smov %s3385_s26 }
 0x4ef   :  { %21 = sbr.rel (!%p3229_p8) target bundleno = 15 (0xf), region = 113 }
 0x4f1   : > { %s3383_s23 = smov %s3374_s11 }
 0x4f6   :  { %1485 = vsyncpa [#allocation6], 1 }
 0x4f7   :  { %1487 = vsyncpa [#allocation6 + $0x1], 1 }
 0x4f8   :  { %1488 = vsyncpa [#allocation9], 1 }
 0x4f9   :  { %1490 = vsyncpa [#allocation9 + $0x1], 1 }
 0x4fa   :  { %1491 = vsyncpa [#allocation7], 1 }
 0x4fb   :  { %1493 = vsyncpa [#allocation7 + $0x1], 1 }

</bundles_post_ra>
